<compile_context>
chip_gen: v5e
topology: v5e:2x2
jax: 0.10.0
libtpu: 0.0.40
codegen_flags: <defaults>
</compile_context>

<pallas_src>
import jax
import jax.numpy as jnp
import numpy as np
from jax.experimental import pallas as pl
from jax.experimental.pallas import tpu as pltpu


def _ceil_div(a, b):
    return -(-a // b)


def _round_up(a, b):
    return _ceil_div(a, b) * b


def _adaptive_bounds(i, insz, outsz):
    # PyTorch AdaptiveAvgPool2d window rule: start=floor(i*I/O), end=ceil((i+1)*I/O)
    return (i * insz) // outsz, _ceil_div((i + 1) * insz, outsz)


# ---------------------------------------------------------------------------
# Fused forward pass
# ---------------------------------------------------------------------------
def downsample_cnn_forward(x_nchw, params, h_w):
    w1, b1, w2, b2 = params
    B, Cin, H, W = x_nchw.shape
    Cmid = w1.shape[0]
    Cout = w2.shape[0]

    # layer hyper-parameters (fixed by the PyTorch module)
    k1, s1, pad1 = h_w[0] * 2, 4, 2      # conv1
    k2, pad2 = 5, 2                      # conv2 (stride 1)
    kp, sp = 3, 2                        # both max pools

    # static spatial bookkeeping (python ints)
    OH1 = (H + 2 * pad1 - k1) // s1 + 1
    OW1 = (W + 2 * pad1 - k1) // s1 + 1
    PH1 = (OH1 - kp) // sp + 1
    PW1 = (OW1 - kp) // sp + 1
    OH2 = (PH1 + 2 * pad2) - k2 + 1
    OW2 = (PW1 + 2 * pad2) - k2 + 1
    PH2 = (OH2 - kp) // sp + 1
    PW2 = (OW2 - kp) // sp + 1
    AH, AW = h_w

    CmP = _round_up(Cmid, 8)
    CoP = _round_up(Cout, 8)
    K1 = k1 * k1 * Cin
    KW = OW1 * K1
    KWP = _round_up(KW, 128)                 # lane-pad conv1 K dim
    OW1P = _round_up(OW1, 128 // CmP)        # pad groups so y1 lane width %128==0
    L1 = OW1P * CmP                          # y1 / pool1 lane width
    L2 = OW2 * CoP                           # y2 lane width
    OH1P = _round_up(OH1, 8)                 # sublane-pad per-image rows
    AOUT = AH * AW * CoP

    # batch blocking: fold batch into M, keep >=2 grid steps when B>=2 (v7x)
    if B >= 2:
        b_blk = max(1, min(B // 2, max(1, 256 // OH1P)))
    else:
        b_blk = 1
    nblk = _ceil_div(B, b_blk)
    Bp = nblk * b_blk

    f32 = jnp.float32
    bf16 = jnp.bfloat16

    # ------------------------------------------------------------------
    # wrapper-side prep (relayouts + weight restructuring, done once)
    # ------------------------------------------------------------------
    x = jnp.transpose(x_nchw, (0, 2, 3, 1))                       # NHWC
    xp = jnp.pad(x, ((0, 0), (pad1, pad1), (pad1, pad1), (0, 0)))
    cols = []
    for ky in range(k1):
        for kx in range(k1):
            cols.append(xp[:, ky:ky + s1 * (OH1 - 1) + 1:s1,
                           kx:kx + s1 * (OW1 - 1) + 1:s1, :])
    patches = jnp.stack(cols, axis=3).reshape(B, OH1, KW)         # (ow,ky,kx,ci) minor
    patches = jnp.pad(patches, ((0, Bp - B), (0, OH1P - OH1), (0, KWP - KW)))
    patches = patches.reshape(nblk, b_blk * OH1P, KWP).astype(bf16)

    # conv1 weights -> block-diagonal [KWP, L1]; one dot yields y1 lane-dense.
    w1m = jnp.transpose(w1, (2, 3, 1, 0)).reshape(K1, Cmid)       # rows (ky,kx,ci)
    w1m = jnp.pad(w1m, ((0, 0), (0, CmP - Cmid)))
    w1_blk = jnp.kron(jnp.eye(OW1, dtype=w1m.dtype), w1m)         # [KW, OW1*CmP]
    w1_blk = jnp.pad(w1_blk, ((0, KWP - KW), (0, L1 - OW1 * CmP))).astype(bf16)
    b1t = jnp.pad(jnp.tile(jnp.pad(b1, (0, CmP - Cmid)), OW1),
                  (0, L1 - OW1 * CmP)).reshape(1, L1).astype(f32)

    # conv2 weights -> banded block-Toeplitz [k2*L1, L2].  In-kernel x2 column
    # layout is dy*L1 + g*CmP + ci, where column-max group g==2*ox1 holds
    # maxpool1 output column ox1.  The placement tensor encodes conv2's W
    # padding and the stride-2 group selection.
    w2p = jnp.transpose(w2, (2, 3, 1, 0))                         # [k2,k2,Cmid,Cout]
    w2p = jnp.pad(w2p, ((0, 0), (0, 0), (0, CmP - Cmid), (0, CoP - Cout)))
    place = np.zeros((k2, OW2, OW1P), np.float32)
    for dx in range(k2):
        for ox2 in range(OW2):
            ox1 = ox2 + dx - pad2
            if 0 <= ox1 < PW1:
                place[dx, ox2, sp * ox1] = 1.0
    w2_toe = jnp.einsum('xog,yxcd->ygcod', jnp.asarray(place), w2p)
    w2_toe = w2_toe.reshape(k2 * L1, L2).astype(bf16)
    b2t = jnp.tile(jnp.pad(b2, (0, CoP - Cout)), OW2).reshape(1, L2).astype(f32)

    def _shl(v, k):
        # shift lanes left by k with zero fill: out[..., l] = v[..., l+k]
        fill = jnp.zeros(v.shape[:-1] + (k,), v.dtype)
        return jnp.concatenate([v[..., k:], fill], axis=-1)

    # ------------------------------------------------------------------
    # fused kernel: all intermediates stay in vregs (no scratch refs)
    # ------------------------------------------------------------------
    def kernel(pat_ref, w1_ref, b1_ref, w2_ref, b2_ref, o_ref):
        # conv1 + bias + ReLU : one MXU dot, M = b_blk*OH1P, N = L1 (128-aligned)
        y1 = jnp.dot(pat_ref[...], w1_ref[...], preferred_element_type=f32)
        y1 = jnp.maximum(y1 + b1_ref[...], 0.0)
        y1 = y1.reshape(b_blk, OH1P, L1)

        # maxpool1 rows: per-window contiguous sublane slices + VPU maxes
        rows = [y1[:, r:r + 1, :] for r in range(sp * (PH1 - 1) + kp)]
        rmax = jnp.concatenate(
            [jnp.maximum(jnp.maximum(rows[sp * p], rows[sp * p + 1]),
                         rows[sp * p + 2]) for p in range(PH1)], axis=1)
        # maxpool1 columns: 2 lane shifts + maxes; group g = window starting at g
        cmax = jnp.maximum(jnp.maximum(rmax, _shl(rmax, CmP)), _shl(rmax, 2 * CmP))
        cmax = cmax.astype(bf16)                           # cast ONCE for conv2

        # conv2 + bias + ReLU : single dot with the k2 row-shifted slabs
        # concatenated along K; Toeplitz weight handles W-padding + stride-2 pick.
        zrow = jnp.zeros((b_blk, pad2, L1), bf16)
        cpad = jnp.concatenate([zrow, cmax, zrow], axis=1)  # [b_blk, PH1+4, L1]
        x2 = jnp.concatenate([cpad[:, dy:dy + OH2, :] for dy in range(k2)], axis=-1)
        x2 = x2.reshape(b_blk * OH2, k2 * L1)
        y2 = jnp.dot(x2, w2_ref[...], preferred_element_type=f32)
        y2 = jnp.maximum(y2 + b2_ref[...], 0.0)
        y2 = y2.reshape(b_blk, OH2, L2)

        # maxpool2 (same scheme)
        rows2 = [y2[:, r:r + 1, :] for r in range(sp * (PH2 - 1) + kp)]
        rmax2 = jnp.concatenate(
            [jnp.maximum(jnp.maximum(rows2[sp * p], rows2[sp * p + 1]),
                         rows2[sp * p + 2]) for p in range(PH2)], axis=1)
        cmax2 = jnp.maximum(jnp.maximum(rmax2, _shl(rmax2, CoP)),
                            _shl(rmax2, 2 * CoP))           # [b_blk, PH2, L2]

        # adaptive average pool -> ONE lane-dense [b_blk, AH*AW*CoP] store
        pieces = []
        for oh in range(AH):
            hs, he = _adaptive_bounds(oh, PH2, AH)
            rsum = cmax2[:, hs:hs + 1, :]
            for r in range(hs + 1, he):
                rsum = rsum + cmax2[:, r:r + 1, :]
            for ow in range(AW):
                ws, we = _adaptive_bounds(ow, PW2, AW)
                csum = rsum[:, :, sp * ws * CoP:(sp * ws + 1) * CoP]
                for wc in range(ws + 1, we):
                    csum = csum + rsum[:, :, sp * wc * CoP:(sp * wc + 1) * CoP]
                pieces.append(csum * (1.0 / ((he - hs) * (we - ws))))
        out = jnp.concatenate(pieces, axis=-1)               # [b_blk, 1, AOUT]
        o_ref[...] = out.reshape(b_blk, AOUT)

    out = pl.pallas_call(
        kernel,
        out_shape=jax.ShapeDtypeStruct((nblk, b_blk, AOUT), f32),
        grid=(nblk,),
        in_specs=[
            pl.BlockSpec((None, b_blk * OH1P, KWP), lambda i: (i, 0, 0)),
            pl.BlockSpec((KWP, L1), lambda i: (0, 0)),
            pl.BlockSpec((1, L1), lambda i: (0, 0)),
            pl.BlockSpec((k2 * L1, L2), lambda i: (0, 0)),
            pl.BlockSpec((1, L2), lambda i: (0, 0)),
        ],
        out_specs=pl.BlockSpec((None, b_blk, AOUT), lambda i: (i, 0, 0)),
        compiler_params=pltpu.CompilerParams(
            dimension_semantics=("parallel",)),
    )(patches, w1_blk, b1t, w2_toe, b2t)

    out = out.reshape(Bp, AH, AW, CoP)[:B, :, :, :Cout]
    return jnp.transpose(out, (0, 3, 1, 2))                      # NCHW


# ---------------------------------------------------------------------------
# Pure-JAX reference (f32, HIGHEST precision) for numerical sanity check
# ---------------------------------------------------------------------------
def ref_forward(x, w1, b1, w2, b2, h_w):
    dn = ("NCHW", "OIHW", "NCHW")
    prec = jax.lax.Precision.HIGHEST
    y = jax.lax.conv_general_dilated(x, w1, (4, 4), ((2, 2), (2, 2)),
                                     dimension_numbers=dn, precision=prec)
    y = jnp.maximum(y + b1[None, :, None, None], 0.0)
    y = jax.lax.reduce_window(y, -jnp.inf, jax.lax.max, (1, 1, 3, 3), (1, 1, 2, 2), "VALID")
    y = jax.lax.conv_general_dilated(y, w2, (1, 1), ((2, 2), (2, 2)),
                                     dimension_numbers=dn, precision=prec)
    y = jnp.maximum(y + b2[None, :, None, None], 0.0)
    y = jax.lax.reduce_window(y, -jnp.inf, jax.lax.max, (1, 1, 3, 3), (1, 1, 2, 2), "VALID")
    B, C, H, W = y.shape
    OH, OW = h_w
    rows = []
    for oh in range(OH):
        hs, he = _adaptive_bounds(oh, H, OH)
        cols = []
        for ow in range(OW):
            ws, we = _adaptive_bounds(ow, W, OW)
            cols.append(jnp.mean(y[:, :, hs:he, ws:we], axis=(2, 3)))
        rows.append(jnp.stack(cols, axis=-1))
    return jnp.stack(rows, axis=-2)                               # [B, C, OH, OW]


# ---------------------------------------------------------------------------
if __name__ == "__main__":
    key = jax.random.PRNGKey(0)
    B, Cin, Cout = 2, 4, 8
    h_w = (2, 2)
    H = W = 64                      # smallest "nice" size that keeps maxpool2 valid
    Cmid = (Cin + Cout) // 2
    k1 = h_w[0] * 2

    ks = jax.random.split(key, 5)
    x = jax.random.normal(ks[0], (B, Cin, H, W), jnp.float32)
    w1 = jax.random.normal(ks[1], (Cmid, Cin, k1, k1), jnp.float32) * 0.1
    b1 = jax.random.normal(ks[2], (Cmid,), jnp.float32) * 0.1
    w2 = jax.random.normal(ks[3], (Cout, Cmid, 5, 5), jnp.float32) * 0.1
    b2 = jax.random.normal(ks[4], (Cout,), jnp.float32) * 0.1

    out = downsample_cnn_forward(x, (w1, b1, w2, b2), h_w)
    out = jax.block_until_ready(out)

    ref = jax.block_until_ready(ref_forward(x, w1, b1, w2, b2, h_w))
    np.testing.assert_allclose(np.asarray(out), np.asarray(ref), rtol=2e-2, atol=2e-2)
    assert out.shape == (B, Cout, h_w[0], h_w[1])

    print("KERNEL_OK")
</pallas_src>

<mosaic_0001>
module attributes {stable_mosaic.version = 11 : i64} {
  func.func @kernel(%arg0: i32, %arg1: memref<1x24x1152xbf16, #tpu.memory_space<vmem>>, %arg2: memref<1152x256xbf16, #tpu.memory_space<vmem>>, %arg3: memref<1x256xf32, #tpu.memory_space<vmem>>, %arg4: memref<1280x64xbf16, #tpu.memory_space<vmem>>, %arg5: memref<1x64xf32, #tpu.memory_space<vmem>>, %arg6: memref<1x1x32xf32, #tpu.memory_space<vmem>>) attributes {dimension_semantics = [#tpu.dimension_semantics<parallel>], iteration_bounds = array<i64: 2>, scalar_prefetch = 0 : i64, scratch_operands = 0 : i64, tpu.core_type = #tpu.core_type<tc>, window_params = [{transform_indices = @transform_0, window_bounds = array<i64: 1, 24, 1152>}, {pipeline_mode = #tpu.pipeline_mode<synchronous>, transform_indices = @transform_1, window_bounds = array<i64: 1152, 256>}, {pipeline_mode = #tpu.pipeline_mode<synchronous>, transform_indices = @transform_2, window_bounds = array<i64: 1, 256>}, {pipeline_mode = #tpu.pipeline_mode<synchronous>, transform_indices = @transform_3, window_bounds = array<i64: 1280, 64>}, {pipeline_mode = #tpu.pipeline_mode<synchronous>, transform_indices = @transform_4, window_bounds = array<i64: 1, 64>}, {transform_indices = @transform_5, window_bounds = array<i64: 1, 1, 32>}]} {
    %c0 = arith.constant 0 : index
    %c0_0 = arith.constant 0 : index
    %c0_1 = arith.constant 0 : index
    %0 = vector.load %arg1[%c0, %c0_0, %c0_1] : memref<1x24x1152xbf16, #tpu.memory_space<vmem>>, vector<1x24x1152xbf16>
    %1 = vector.shape_cast %0 : vector<1x24x1152xbf16> to vector<24x1152xbf16>
    %c0_2 = arith.constant 0 : index
    %c0_3 = arith.constant 0 : index
    %2 = vector.load %arg2[%c0_2, %c0_3] : memref<1152x256xbf16, #tpu.memory_space<vmem>>, vector<1152x256xbf16>
    %cst = arith.constant dense<0.000000e+00> : vector<24x256xf32>
    %3 = tpu.matmul %1, %2, %cst {dimension_numbers = #tpu.dot_dimension_numbers<[1], [0], [0], [1], [0, 0, 1, 1], [], []>} : vector<24x1152xbf16>, vector<1152x256xbf16>, vector<24x256xf32> -> vector<24x256xf32>
    %c0_4 = arith.constant 0 : index
    %c0_5 = arith.constant 0 : index
    %4 = vector.load %arg3[%c0_4, %c0_5] : memref<1x256xf32, #tpu.memory_space<vmem>>, vector<1x256xf32>
    %5 = vector.broadcast %4 : vector<1x256xf32> to vector<24x256xf32>
    %6 = arith.addf %3, %5 : vector<24x256xf32>
    %cst_6 = arith.constant 0.000000e+00 : f32
    %7 = vector.broadcast %cst_6 : f32 to vector<24x256xf32>
    %8 = arith.maximumf %6, %7 : vector<24x256xf32>
    %9 = vector.shape_cast %8 : vector<24x256xf32> to vector<1x24x256xf32>
    %10 = vector.extract_strided_slice %9 {offsets = [0, 0, 0], sizes = [1, 1, 256], strides = [1, 1, 1]} : vector<1x24x256xf32> to vector<1x1x256xf32>
    %11 = vector.extract_strided_slice %9 {offsets = [0, 1, 0], sizes = [1, 1, 256], strides = [1, 1, 1]} : vector<1x24x256xf32> to vector<1x1x256xf32>
    %12 = vector.extract_strided_slice %9 {offsets = [0, 2, 0], sizes = [1, 1, 256], strides = [1, 1, 1]} : vector<1x24x256xf32> to vector<1x1x256xf32>
    %13 = vector.extract_strided_slice %9 {offsets = [0, 3, 0], sizes = [1, 1, 256], strides = [1, 1, 1]} : vector<1x24x256xf32> to vector<1x1x256xf32>
    %14 = vector.extract_strided_slice %9 {offsets = [0, 4, 0], sizes = [1, 1, 256], strides = [1, 1, 1]} : vector<1x24x256xf32> to vector<1x1x256xf32>
    %15 = vector.extract_strided_slice %9 {offsets = [0, 5, 0], sizes = [1, 1, 256], strides = [1, 1, 1]} : vector<1x24x256xf32> to vector<1x1x256xf32>
    %16 = vector.extract_strided_slice %9 {offsets = [0, 6, 0], sizes = [1, 1, 256], strides = [1, 1, 1]} : vector<1x24x256xf32> to vector<1x1x256xf32>
    %17 = vector.extract_strided_slice %9 {offsets = [0, 7, 0], sizes = [1, 1, 256], strides = [1, 1, 1]} : vector<1x24x256xf32> to vector<1x1x256xf32>
    %18 = vector.extract_strided_slice %9 {offsets = [0, 8, 0], sizes = [1, 1, 256], strides = [1, 1, 1]} : vector<1x24x256xf32> to vector<1x1x256xf32>
    %19 = vector.extract_strided_slice %9 {offsets = [0, 9, 0], sizes = [1, 1, 256], strides = [1, 1, 1]} : vector<1x24x256xf32> to vector<1x1x256xf32>
    %20 = vector.extract_strided_slice %9 {offsets = [0, 10, 0], sizes = [1, 1, 256], strides = [1, 1, 1]} : vector<1x24x256xf32> to vector<1x1x256xf32>
    %21 = vector.extract_strided_slice %9 {offsets = [0, 11, 0], sizes = [1, 1, 256], strides = [1, 1, 1]} : vector<1x24x256xf32> to vector<1x1x256xf32>
    %22 = vector.extract_strided_slice %9 {offsets = [0, 12, 0], sizes = [1, 1, 256], strides = [1, 1, 1]} : vector<1x24x256xf32> to vector<1x1x256xf32>
    %23 = vector.extract_strided_slice %9 {offsets = [0, 13, 0], sizes = [1, 1, 256], strides = [1, 1, 1]} : vector<1x24x256xf32> to vector<1x1x256xf32>
    %24 = vector.extract_strided_slice %9 {offsets = [0, 14, 0], sizes = [1, 1, 256], strides = [1, 1, 1]} : vector<1x24x256xf32> to vector<1x1x256xf32>
    %25 = vector.extract_strided_slice %9 {offsets = [0, 15, 0], sizes = [1, 1, 256], strides = [1, 1, 1]} : vector<1x24x256xf32> to vector<1x1x256xf32>
    %26 = vector.extract_strided_slice %9 {offsets = [0, 16, 0], sizes = [1, 1, 256], strides = [1, 1, 1]} : vector<1x24x256xf32> to vector<1x1x256xf32>
    %27 = arith.maximumf %10, %11 : vector<1x1x256xf32>
    %28 = arith.maximumf %27, %12 : vector<1x1x256xf32>
    %29 = arith.maximumf %12, %13 : vector<1x1x256xf32>
    %30 = arith.maximumf %29, %14 : vector<1x1x256xf32>
    %31 = arith.maximumf %14, %15 : vector<1x1x256xf32>
    %32 = arith.maximumf %31, %16 : vector<1x1x256xf32>
    %33 = arith.maximumf %16, %17 : vector<1x1x256xf32>
    %34 = arith.maximumf %33, %18 : vector<1x1x256xf32>
    %35 = arith.maximumf %18, %19 : vector<1x1x256xf32>
    %36 = arith.maximumf %35, %20 : vector<1x1x256xf32>
    %37 = arith.maximumf %20, %21 : vector<1x1x256xf32>
    %38 = arith.maximumf %37, %22 : vector<1x1x256xf32>
    %39 = arith.maximumf %22, %23 : vector<1x1x256xf32>
    %40 = arith.maximumf %39, %24 : vector<1x1x256xf32>
    %41 = arith.maximumf %24, %25 : vector<1x1x256xf32>
    %42 = arith.maximumf %41, %26 : vector<1x1x256xf32>
    %43 = tpu.concatenate %28, %30, %32, %34, %36, %38, %40, %42 in 1 : vector<1x1x256xf32>, vector<1x1x256xf32>, vector<1x1x256xf32>, vector<1x1x256xf32>, vector<1x1x256xf32>, vector<1x1x256xf32>, vector<1x1x256xf32>, vector<1x1x256xf32> -> vector<1x8x256xf32>
    %cst_7 = arith.constant 0.000000e+00 : f32
    %44 = vector.broadcast %cst_7 : f32 to vector<1x8x8xf32>
    %45 = vector.extract_strided_slice %43 {offsets = [0, 0, 8], sizes = [1, 8, 248], strides = [1, 1, 1]} : vector<1x8x256xf32> to vector<1x8x248xf32>
    %46 = tpu.concatenate %45, %44 in 2 : vector<1x8x248xf32>, vector<1x8x8xf32> -> vector<1x8x256xf32>
    %47 = arith.maximumf %43, %46 : vector<1x8x256xf32>
    %cst_8 = arith.constant 0.000000e+00 : f32
    %48 = vector.broadcast %cst_8 : f32 to vector<1x8x16xf32>
    %49 = vector.extract_strided_slice %43 {offsets = [0, 0, 16], sizes = [1, 8, 240], strides = [1, 1, 1]} : vector<1x8x256xf32> to vector<1x8x240xf32>
    %50 = tpu.concatenate %49, %48 in 2 : vector<1x8x240xf32>, vector<1x8x16xf32> -> vector<1x8x256xf32>
    %51 = arith.maximumf %47, %50 : vector<1x8x256xf32>
    %52 = arith.truncf %51 : vector<1x8x256xf32> to vector<1x8x256xbf16>
    %cst_9 = arith.constant 0.000000e+00 : bf16
    %53 = vector.broadcast %cst_9 : bf16 to vector<1x2x256xbf16>
    %54 = tpu.concatenate %53, %52, %53 in 1 : vector<1x2x256xbf16>, vector<1x8x256xbf16>, vector<1x2x256xbf16> -> vector<1x12x256xbf16>
    %55 = vector.extract_strided_slice %54 {offsets = [0, 0, 0], sizes = [1, 8, 256], strides = [1, 1, 1]} : vector<1x12x256xbf16> to vector<1x8x256xbf16>
    %56 = vector.extract_strided_slice %54 {offsets = [0, 1, 0], sizes = [1, 8, 256], strides = [1, 1, 1]} : vector<1x12x256xbf16> to vector<1x8x256xbf16>
    %57 = vector.extract_strided_slice %54 {offsets = [0, 2, 0], sizes = [1, 8, 256], strides = [1, 1, 1]} : vector<1x12x256xbf16> to vector<1x8x256xbf16>
    %58 = vector.extract_strided_slice %54 {offsets = [0, 3, 0], sizes = [1, 8, 256], strides = [1, 1, 1]} : vector<1x12x256xbf16> to vector<1x8x256xbf16>
    %59 = vector.extract_strided_slice %54 {offsets = [0, 4, 0], sizes = [1, 8, 256], strides = [1, 1, 1]} : vector<1x12x256xbf16> to vector<1x8x256xbf16>
    %60 = tpu.concatenate %55, %56, %57, %58, %59 in 2 : vector<1x8x256xbf16>, vector<1x8x256xbf16>, vector<1x8x256xbf16>, vector<1x8x256xbf16>, vector<1x8x256xbf16> -> vector<1x8x1280xbf16>
    %61 = vector.shape_cast %60 : vector<1x8x1280xbf16> to vector<8x1280xbf16>
    %c0_10 = arith.constant 0 : index
    %c0_11 = arith.constant 0 : index
    %62 = vector.load %arg4[%c0_10, %c0_11] : memref<1280x64xbf16, #tpu.memory_space<vmem>>, vector<1280x64xbf16>
    %cst_12 = arith.constant dense<0.000000e+00> : vector<8x64xf32>
    %63 = tpu.matmul %61, %62, %cst_12 {dimension_numbers = #tpu.dot_dimension_numbers<[1], [0], [0], [1], [0, 0, 1, 1], [], []>} : vector<8x1280xbf16>, vector<1280x64xbf16>, vector<8x64xf32> -> vector<8x64xf32>
    %c0_13 = arith.constant 0 : index
    %c0_14 = arith.constant 0 : index
    %64 = vector.load %arg5[%c0_13, %c0_14] : memref<1x64xf32, #tpu.memory_space<vmem>>, vector<1x64xf32>
    %65 = vector.broadcast %64 : vector<1x64xf32> to vector<8x64xf32>
    %66 = arith.addf %63, %65 : vector<8x64xf32>
    %cst_15 = arith.constant 0.000000e+00 : f32
    %67 = vector.broadcast %cst_15 : f32 to vector<8x64xf32>
    %68 = arith.maximumf %66, %67 : vector<8x64xf32>
    %69 = vector.shape_cast %68 : vector<8x64xf32> to vector<1x8x64xf32>
    %70 = vector.extract_strided_slice %69 {offsets = [0, 0, 0], sizes = [1, 1, 64], strides = [1, 1, 1]} : vector<1x8x64xf32> to vector<1x1x64xf32>
    %71 = vector.extract_strided_slice %69 {offsets = [0, 1, 0], sizes = [1, 1, 64], strides = [1, 1, 1]} : vector<1x8x64xf32> to vector<1x1x64xf32>
    %72 = vector.extract_strided_slice %69 {offsets = [0, 2, 0], sizes = [1, 1, 64], strides = [1, 1, 1]} : vector<1x8x64xf32> to vector<1x1x64xf32>
    %73 = vector.extract_strided_slice %69 {offsets = [0, 3, 0], sizes = [1, 1, 64], strides = [1, 1, 1]} : vector<1x8x64xf32> to vector<1x1x64xf32>
    %74 = vector.extract_strided_slice %69 {offsets = [0, 4, 0], sizes = [1, 1, 64], strides = [1, 1, 1]} : vector<1x8x64xf32> to vector<1x1x64xf32>
    %75 = vector.extract_strided_slice %69 {offsets = [0, 5, 0], sizes = [1, 1, 64], strides = [1, 1, 1]} : vector<1x8x64xf32> to vector<1x1x64xf32>
    %76 = vector.extract_strided_slice %69 {offsets = [0, 6, 0], sizes = [1, 1, 64], strides = [1, 1, 1]} : vector<1x8x64xf32> to vector<1x1x64xf32>
    %77 = arith.maximumf %70, %71 : vector<1x1x64xf32>
    %78 = arith.maximumf %77, %72 : vector<1x1x64xf32>
    %79 = arith.maximumf %72, %73 : vector<1x1x64xf32>
    %80 = arith.maximumf %79, %74 : vector<1x1x64xf32>
    %81 = arith.maximumf %74, %75 : vector<1x1x64xf32>
    %82 = arith.maximumf %81, %76 : vector<1x1x64xf32>
    %83 = tpu.concatenate %78, %80, %82 in 1 : vector<1x1x64xf32>, vector<1x1x64xf32>, vector<1x1x64xf32> -> vector<1x3x64xf32>
    %cst_16 = arith.constant 0.000000e+00 : f32
    %84 = vector.broadcast %cst_16 : f32 to vector<1x3x8xf32>
    %85 = vector.extract_strided_slice %83 {offsets = [0, 0, 8], sizes = [1, 3, 56], strides = [1, 1, 1]} : vector<1x3x64xf32> to vector<1x3x56xf32>
    %86 = tpu.concatenate %85, %84 in 2 : vector<1x3x56xf32>, vector<1x3x8xf32> -> vector<1x3x64xf32>
    %87 = arith.maximumf %83, %86 : vector<1x3x64xf32>
    %cst_17 = arith.constant 0.000000e+00 : f32
    %88 = vector.broadcast %cst_17 : f32 to vector<1x3x16xf32>
    %89 = vector.extract_strided_slice %83 {offsets = [0, 0, 16], sizes = [1, 3, 48], strides = [1, 1, 1]} : vector<1x3x64xf32> to vector<1x3x48xf32>
    %90 = tpu.concatenate %89, %88 in 2 : vector<1x3x48xf32>, vector<1x3x16xf32> -> vector<1x3x64xf32>
    %91 = arith.maximumf %87, %90 : vector<1x3x64xf32>
    %92 = vector.extract_strided_slice %91 {offsets = [0, 0, 0], sizes = [1, 1, 64], strides = [1, 1, 1]} : vector<1x3x64xf32> to vector<1x1x64xf32>
    %93 = vector.extract_strided_slice %91 {offsets = [0, 1, 0], sizes = [1, 1, 64], strides = [1, 1, 1]} : vector<1x3x64xf32> to vector<1x1x64xf32>
    %94 = arith.addf %92, %93 : vector<1x1x64xf32>
    %95 = vector.extract_strided_slice %94 {offsets = [0, 0, 0], sizes = [1, 1, 8], strides = [1, 1, 1]} : vector<1x1x64xf32> to vector<1x1x8xf32>
    %96 = vector.extract_strided_slice %94 {offsets = [0, 0, 16], sizes = [1, 1, 8], strides = [1, 1, 1]} : vector<1x1x64xf32> to vector<1x1x8xf32>
    %97 = arith.addf %95, %96 : vector<1x1x8xf32>
    %cst_18 = arith.constant 2.500000e-01 : f32
    %98 = vector.broadcast %cst_18 : f32 to vector<1x1x8xf32>
    %99 = arith.mulf %97, %98 : vector<1x1x8xf32>
    %100 = vector.extract_strided_slice %94 {offsets = [0, 0, 16], sizes = [1, 1, 8], strides = [1, 1, 1]} : vector<1x1x64xf32> to vector<1x1x8xf32>
    %101 = vector.extract_strided_slice %94 {offsets = [0, 0, 32], sizes = [1, 1, 8], strides = [1, 1, 1]} : vector<1x1x64xf32> to vector<1x1x8xf32>
    %102 = arith.addf %100, %101 : vector<1x1x8xf32>
    %cst_19 = arith.constant 2.500000e-01 : f32
    %103 = vector.broadcast %cst_19 : f32 to vector<1x1x8xf32>
    %104 = arith.mulf %102, %103 : vector<1x1x8xf32>
    %105 = vector.extract_strided_slice %91 {offsets = [0, 1, 0], sizes = [1, 1, 64], strides = [1, 1, 1]} : vector<1x3x64xf32> to vector<1x1x64xf32>
    %106 = vector.extract_strided_slice %91 {offsets = [0, 2, 0], sizes = [1, 1, 64], strides = [1, 1, 1]} : vector<1x3x64xf32> to vector<1x1x64xf32>
    %107 = arith.addf %105, %106 : vector<1x1x64xf32>
    %108 = vector.extract_strided_slice %107 {offsets = [0, 0, 0], sizes = [1, 1, 8], strides = [1, 1, 1]} : vector<1x1x64xf32> to vector<1x1x8xf32>
    %109 = vector.extract_strided_slice %107 {offsets = [0, 0, 16], sizes = [1, 1, 8], strides = [1, 1, 1]} : vector<1x1x64xf32> to vector<1x1x8xf32>
    %110 = arith.addf %108, %109 : vector<1x1x8xf32>
    %cst_20 = arith.constant 2.500000e-01 : f32
    %111 = vector.broadcast %cst_20 : f32 to vector<1x1x8xf32>
    %112 = arith.mulf %110, %111 : vector<1x1x8xf32>
    %113 = vector.extract_strided_slice %107 {offsets = [0, 0, 16], sizes = [1, 1, 8], strides = [1, 1, 1]} : vector<1x1x64xf32> to vector<1x1x8xf32>
    %114 = vector.extract_strided_slice %107 {offsets = [0, 0, 32], sizes = [1, 1, 8], strides = [1, 1, 1]} : vector<1x1x64xf32> to vector<1x1x8xf32>
    %115 = arith.addf %113, %114 : vector<1x1x8xf32>
    %cst_21 = arith.constant 2.500000e-01 : f32
    %116 = vector.broadcast %cst_21 : f32 to vector<1x1x8xf32>
    %117 = arith.mulf %115, %116 : vector<1x1x8xf32>
    %118 = tpu.concatenate %99, %104, %112, %117 in 2 : vector<1x1x8xf32>, vector<1x1x8xf32>, vector<1x1x8xf32>, vector<1x1x8xf32> -> vector<1x1x32xf32>
    %119 = vector.shape_cast %118 : vector<1x1x32xf32> to vector<1x32xf32>
    %c0_22 = arith.constant 0 : index
    %c0_23 = arith.constant 0 : index
    %c0_24 = arith.constant 0 : index
    %120 = vector.load %arg6[%c0_22, %c0_23, %c0_24] : memref<1x1x32xf32, #tpu.memory_space<vmem>>, vector<1x1x32xf32>
    %121 = vector.shape_cast %120 : vector<1x1x32xf32> to vector<1x32xf32>
    %122 = vector.shape_cast %119 : vector<1x32xf32> to vector<1x1x32xf32>
    tpu.vector_store %arg6[%c0_22, %c0_23, %c0_24], %122 {strides = array<i32>} : memref<1x1x32xf32, #tpu.memory_space<vmem>>, vector<1x1x32xf32>,
    return
  }
  func.func @transform_0(%arg0: i32) -> (i32, i32, i32) {
    %c0_i32 = arith.constant 0 : i32
    %c0_i32_0 = arith.constant 0 : i32
    %c0_i32_1 = arith.constant 0 : i32
    return %arg0, %c0_i32, %c0_i32_0 : i32, i32, i32
  }
  func.func @transform_1(%arg0: i32) -> (i32, i32) {
    %c0_i32 = arith.constant 0 : i32
    %c0_i32_0 = arith.constant 0 : i32
    %c0_i32_1 = arith.constant 0 : i32
    return %c0_i32, %c0_i32_0 : i32, i32
  }
  func.func @transform_2(%arg0: i32) -> (i32, i32) {
    %c0_i32 = arith.constant 0 : i32
    %c0_i32_0 = arith.constant 0 : i32
    %c0_i32_1 = arith.constant 0 : i32
    return %c0_i32, %c0_i32_0 : i32, i32
  }
  func.func @transform_3(%arg0: i32) -> (i32, i32) {
    %c0_i32 = arith.constant 0 : i32
    %c0_i32_0 = arith.constant 0 : i32
    %c0_i32_1 = arith.constant 0 : i32
    return %c0_i32, %c0_i32_0 : i32, i32
  }
  func.func @transform_4(%arg0: i32) -> (i32, i32) {
    %c0_i32 = arith.constant 0 : i32
    %c0_i32_0 = arith.constant 0 : i32
    %c0_i32_1 = arith.constant 0 : i32
    return %c0_i32, %c0_i32_0 : i32, i32
  }
  func.func @transform_5(%arg0: i32) -> (i32, i32, i32) {
    %c0_i32 = arith.constant 0 : i32
    %c0_i32_0 = arith.constant 0 : i32
    %c0_i32_1 = arith.constant 0 : i32
    return %arg0, %c0_i32, %c0_i32_0 : i32, i32, i32
  }
}

</mosaic_0001>

<bundles_post_ra>
// kernel: tpu_custom_call.1
= control target key start
LH: loop header
LB: loop body
LE: loop exit
PB: predicated region body
PF: predicated region fallthrough
CT: control target
= control target key end

     0   :  { %10 = vsyncpa [#allocation3], 0  ;;  %s4474_s0 = inlined_call_operand.vmem [shape: bf16[2,24,1152], index: 0, kind: input, shape index: {}]   ;;  %s4475_s1 = inlined_call_operand.hbm [shape: bf16[1152,256], index: 1, kind: input, shape index: {}]   ;;  %s4476_s2 = inlined_call_operand.vmem [shape: f32[1,256], index: 2, kind: input, shape index: {}]   ;;  %s4477_s3 = inlined_call_operand.vmem [shape: bf16[1280,64], index: 3, kind: input, shape index: {}]   ;;  %s4478_s4 = inlined_call_operand.vmem [shape: f32[1,64], index: 4, kind: input, shape index: {}]   ;;  %s4479_s5 = inlined_call_operand.hbm [shape: f32[2,1,32], index: 5, kind: output, shape index: {}]  }
   0x1   :  { %11 = vsyncpa [#allocation4], 0 }
   0x2   :  { %13 = vsyncpa [#allocation4 + $0x1], 0  ;;  %s3991_s18 = smov 0   ;;  %s3993_s19 = smov 0  }
   0x3   :  { %s3995_s20 = smov 0   ;;  %s3997_s21 = smov 0  }
   0x4 LB: > { %s4012_s22 = sadd.s32 4294967295, %s3952_s21   ;;  %s2612_s23 = sadd.s32 4294967294, %s3952_s21   ;;  %s3952_s21 = sphi %s3997_s21, %s4485_s21   ;;  %s3948_s20 = sphi %s3995_s20, %s4484_s20   ;;  %s3944_s19 = sphi %s3993_s19, %s4483_s19   ;;  %s3940_s18 = sphi %s3991_s18, %s4482_s18  }
   0x5   : > { %s4016_s24 = sadd.s32 1, %s3952_s21   ;;  %s136_s25 = sadd.s32 1, %s3948_s20 }
   0x6   : > { %s133_s26 = ssub.s32 %s3952_s21, %s4016_s24  ;;  %p146_p0 = scmp.ne.s32.totalorder %s3948_s20, %s3944_s19 }
   0x7   : > { %p134_p1 = scmp.eq.s32.totalorder %s133_s26, 0  ;;  %p147_p2 = scmp.eq.s32.totalorder %s4012_s22, 1 }
   0x8   : > { %p152_p3 = scmp.ne.s32.totalorder %s3944_s19, %s3940_s18  ;;  %p153_p4 = scmp.eq.s32.totalorder %s2612_s23, 1 }
   0x9   : > { %s4027_s27 = scalar_select %p134_p1, %s3948_s20, %s136_s25  }
   0xa   : > { %p4029_p5 = por %p147_p2, %p146_p0  ;;  %p4033_p6 = por %p153_p4, %p152_p3 }
   0xb   : > { %p2613_p7 = scmp.ge.s32.totalorder %s3952_s21, 1  ;;  %p160_p8 = scmp.lt.s32.totalorder %s3952_s21, 3 }
   0xc   : > { %p3803_p9 = scmp.eq.s32.totalorder %s4012_s22, 0  ;;  %s171_s7 = sshll.u32 %s4475_s1, 4  ;;  %s172_s7 = int_to_ptr.hbm [resolvable:$true] %s171_s7 }
   0xd   : > { %p161_p10 = pnand %p2613_p7, %p160_p8  ;;  %s3954_s8 = smov [#allocation2]  }
   0xe   : > { %s173_s9 = sshll.u32 %s3954_s8, 4  ;;  %s3955_s10 = smov 128   ;;  %s174_s9 = int_to_ptr.vmem [resolvable:$true] %s173_s9 }
   0xf   : > { %p3795_p11 = pneg %p161_p10  ;;  %s3956_s11 = smov 8  }
  0x10   : > { %206 = sbr.rel (%p161_p10) target bundleno = 1005 (0x3ed), region = 40 }
  0x11   : > { %p3796_p12 = pnand %p3803_p9, %p3795_p11 }
  0x13   : > { %3798 = dma.hbm_to_vmem [thread:$0]  (!%p3796_p12), %s172_s7, 18432, %s174_s9, [#allocation3], %s3955_s10, %s3955_s10, %s3956_s11  }
  0x15   : > { %3931 = dma.done.wait (%p3803_p9), [#allocation3], 18432  }
  0x16   : > { %3933 = vsyncadd (%p3803_p9), [#allocation3], 4294948864  ;;  %v2713_v0 = vld [vmem:[#allocation2 + $0x70] sm:$0xf]  ;;  %v3579_v1 = vld [vmem:[#allocation2 + $0x74] sm:$0xf0]  ;;  %s2541_s11 = scalar_lea.hbm %s4479_s5, %s4012_s22 }
  0x17   : > { %v2777_v2 = vld [vmem:[#allocation2 + $0xf0] sm:$0xf]  ;;  %v2714_v3 = vor.u32 %v3579_v1, %v2713_v0  ;;  %v3595_v4 = vld [vmem:[#allocation2 + $0xf4] sm:$0xf0]  ;;  %v2705_v11 = vld [vmem:[#allocation2 + $0x60] sm:$0xf] }
  0x18   : > { %v2841_v5 = vld [vmem:[#allocation2 + $0x170] sm:$0xf]  ;;  %v3611_v6 = vld [vmem:[#allocation2 + $0x174] sm:$0xf0]  ;;  %v2778_v7 = vor.u32 %v3595_v4, %v2777_v2  ;;  %v3577_v13 = vld [vmem:[#allocation2 + $0x64] sm:$0xf0] }
  0x19   : > { %v2842_v8 = vor.u32 %v3611_v6, %v2841_v5  ;;  %v2905_v9 = vld [vmem:[#allocation2 + $0x1f0] sm:$0xf]  ;;  %v3627_v10 = vld [vmem:[#allocation2 + $0x1f4] sm:$0xf0]  ;;  %1203 = vmatpush.bf16.msra.mxu0 %v2714_v3  ;;  %v2769_v14 = vld [vmem:[#allocation2 + $0xe0] sm:$0xf]  ;;  %v2706_v16 = vor.u32 %v3577_v13, %v2705_v11 }
  0x1a   : > { %v2906_v12 = vor.u32 %v3627_v10, %v2905_v9  ;;  %v3593_v15 = vld [vmem:[#allocation2 + $0xe4] sm:$0xf0]  ;;  %1221 = vmatpush.bf16.msra.mxu1 %v2778_v7  ;;  %v2833_v18 = vld [vmem:[#allocation2 + $0x160] sm:$0xf]  ;;  %v2697_v23 = vld [vmem:[#allocation2 + $0x50] sm:$0xf] }
  0x1b   : > { %1239 = vmatpush.bf16.msra.mxu2 %v2842_v8  ;;  %v2770_v17 = vor.u32 %v3593_v15, %v2769_v14  ;;  %v3609_v19 = vld [vmem:[#allocation2 + $0x164] sm:$0xf0]  ;;  %v2897_v20 = vld [vmem:[#allocation2 + $0x1e0] sm:$0xf]  ;;  %v3575_v24 = vld [vmem:[#allocation2 + $0x54] sm:$0xf0] }
  0x1c   : > { %1257 = vmatpush.bf16.msra.mxu3 %v2906_v12  ;;  %v2834_v21 = vor.u32 %v3609_v19, %v2833_v18  ;;  %v3625_v22 = vld [vmem:[#allocation2 + $0x1e4] sm:$0xf0]  ;;  %v2761_v26 = vld [vmem:[#allocation2 + $0xd0] sm:$0xf]  ;;  %v3591_v27 = vld [vmem:[#allocation2 + $0xd4] sm:$0xf0]  ;;  %v2698_v29 = vor.u32 %v3575_v24, %v2697_v23 }
  0x1d   : > { %v2898_v25 = vor.u32 %v3625_v22, %v2897_v20  ;;  %v2825_v28 = vld [vmem:[#allocation2 + $0x150] sm:$0xf]  ;;  %1204 = vmatpush.bf16.msra.mxu0 %v2706_v16  ;;  %v3607_v30 = vld [vmem:[#allocation2 + $0x154] sm:$0xf0]  ;;  %v2762_v33 = vor.u32 %v3591_v27, %v2761_v26  ;;  %v2689_v35 = vld [vmem:[#allocation2 + $0x40] sm:$0xf] }
  0x1e   : > { %v2889_v31 = vld [vmem:[#allocation2 + $0x1d0] sm:$0xf]  ;;  %v3623_v32 = vld [vmem:[#allocation2 + $0x1d4] sm:$0xf0]  ;;  %1222 = vmatpush.bf16.msra.mxu1 %v2770_v17  ;;  %v2826_v34 = vor.u32 %v3607_v30, %v2825_v28  ;;  %v3573_v36 = vld [vmem:[#allocation2 + $0x44] sm:$0xf0] }
  0x1f   : > { %1240 = vmatpush.bf16.msra.mxu2 %v2834_v21  ;;  %v2753_v37 = vld [vmem:[#allocation2 + $0xc0] sm:$0xf]  ;;  %v2890_v38 = vor.u32 %v3623_v32, %v2889_v31  ;;  %v3589_v39 = vld [vmem:[#allocation2 + $0xc4] sm:$0xf0]  ;;  %p234_p13 = scmp.lt.s32.totalorder %s4012_s22, 1  ;;  %v2690_v44 = vor.u32 %v3573_v36, %v2689_v35  ;;  %vm1607_vm0 = vcmask 1040384  }
  0x20   : > { %1258 = vmatpush.bf16.msra.mxu3 %v2898_v25  ;;  %v2817_v40 = vld [vmem:[#allocation2 + $0x140] sm:$0xf]  ;;  %v3605_v41 = vld [vmem:[#allocation2 + $0x144] sm:$0xf0]  ;;  %v2754_v45 = vor.u32 %v3589_v39, %v2753_v37  ;;  %v2681_v47 = vld [vmem:[#allocation2 + $0x30] sm:$0xf] }
  0x21   : > { %v2881_v42 = vld [vmem:[#allocation2 + $0x1c0] sm:$0xf]  ;;  %v3621_v43 = vld [vmem:[#allocation2 + $0x1c4] sm:$0xf0]  ;;  %1205 = vmatpush.bf16.msra.mxu0 %v2698_v29  ;;  %v2818_v46 = vor.u32 %v3605_v41, %v2817_v40  ;;  %v3571_v48 = vld [vmem:[#allocation2 + $0x34] sm:$0xf0] }
  0x22   : > { %1223 = vmatpush.bf16.msra.mxu1 %v2762_v33  ;;  %v2745_v49 = vld [vmem:[#allocation2 + $0xb0] sm:$0xf]  ;;  %v2882_v50 = vor.u32 %v3621_v43, %v2881_v42  ;;  %v3587_v51 = vld [vmem:[#allocation2 + $0xb4] sm:$0xf0]  ;;  %s4053_s12 = scalar_select %p234_p13, %s4012_s22, 1  ;;  %v2682_v56 = vor.u32 %v3571_v48, %v2681_v47  ;;  %vm1610_vm1 = vcmask 1041408  }
  0x23   : > { %1241 = vmatpush.bf16.msra.mxu2 %v2826_v34  ;;  %v2809_v52 = vld [vmem:[#allocation2 + $0x130] sm:$0xf]  ;;  %v3603_v53 = vld [vmem:[#allocation2 + $0x134] sm:$0xf0]  ;;  %v2746_v57 = vor.u32 %v3587_v51, %v2745_v49  ;;  %v2673_v59 = vld [vmem:[#allocation2 + $0x20] sm:$0xf] }
  0x24   : > { %1259 = vmatpush.bf16.msra.mxu3 %v2890_v38  ;;  %v2873_v54 = vld [vmem:[#allocation2 + $0x1b0] sm:$0xf]  ;;  %v3619_v55 = vld [vmem:[#allocation2 + $0x1b4] sm:$0xf0]  ;;  %v2810_v58 = vor.u32 %v3603_v53, %v2809_v52  ;;  %v3569_v60 = vld [vmem:[#allocation2 + $0x24] sm:$0xf0] }
  0x25   : > { %1206 = vmatpush.bf16.msra.mxu0 %v2690_v44  ;;  %v2737_v61 = vld [vmem:[#allocation2 + $0xa0] sm:$0xf]  ;;  %v2874_v62 = vor.u32 %v3619_v55, %v2873_v54  ;;  %v3585_v63 = vld [vmem:[#allocation2 + $0xa4] sm:$0xf0]  ;;  %s3788_s13 = smul.u32 108, %s4053_s12  ;;  %v2674_v4 = vor.u32 %v3569_v60, %v2673_v59  ;;  %vm1613_vm2 = vcmask 1042432  }
  0x26   : > { %1224 = vmatpush.bf16.msra.mxu1 %v2754_v45  ;;  %v2801_v0 = vld [vmem:[#allocation2 + $0x120] sm:$0xf]  ;;  %v3601_v1 = vld [vmem:[#allocation2 + $0x124] sm:$0xf0]  ;;  %v2738_v5 = vor.u32 %v3585_v63, %v2737_v61  ;;  %v2665_v7 = vld [vmem:[#allocation2 + $0x10] sm:$0xf] }
  0x27   : > { %1242 = vmatpush.bf16.msra.mxu2 %v2818_v46  ;;  %v2865_v2 = vld [vmem:[#allocation2 + $0x1a0] sm:$0xf]  ;;  %v3617_v3 = vld [vmem:[#allocation2 + $0x1a4] sm:$0xf0]  ;;  %v2802_v6 = vor.u32 %v3601_v1, %v2801_v0  ;;  %v3567_v8 = vld [vmem:[#allocation2 + $0x14] sm:$0xf0]  ;;  %s4059_s16 = scalar_lea.vmem %s4474_s0, %s3788_s13 }
  0x28   : > { %1260 = vmatpush.bf16.msra.mxu3 %v2882_v50  ;;  %v2729_v9 = vld [vmem:[#allocation2 + $0x90] sm:$0xf]  ;;  %v2866_v10 = vor.u32 %v3617_v3, %v2865_v2  ;;  %v3583_v11 = vld [vmem:[#allocation2 + $0x94] sm:$0xf0]  ;;  %v2657_v16 = vld [vmem:[#allocation2] sm:$0xf]  ;;  %v2666_v17 = vor.u32 %v3567_v8, %v2665_v7 }
  0x29   : > { %1207 = vmatpush.bf16.msra.mxu0 %v2682_v56  ;;  %v2793_v12 = vld [vmem:[#allocation2 + $0x110] sm:$0xf]  ;;  %v3599_v13 = vld [vmem:[#allocation2 + $0x114] sm:$0xf0]  ;;  %v3565_v18 = vld [vmem:[#allocation2 + $0x4] sm:$0xf0]  ;;  %v2730_v21 = vor.u32 %v3583_v11, %v2729_v9 }
  0x2a   : > { %1225 = vmatpush.bf16.msra.mxu1 %v2746_v57  ;;  %v2857_v14 = vld [vmem:[#allocation2 + $0x190] sm:$0xf]  ;;  %v3615_v15 = vld [vmem:[#allocation2 + $0x194] sm:$0xf0]  ;;  %v2721_v19 = vld [vmem:[#allocation2 + $0x80] sm:$0xf]  ;;  %v2794_v22 = vor.u32 %v3599_v13, %v2793_v12  ;;  %v2658_v34 = vor.u32 %v3565_v18, %v2657_v16 }
  0x2b   : > { %1243 = vmatpush.bf16.msra.mxu2 %v2810_v58  ;;  %v3581_v20 = vld [vmem:[#allocation2 + $0x84] sm:$0xf0]  ;;  %v2785_v23 = vld [vmem:[#allocation2 + $0x100] sm:$0xf]  ;;  %v2858_v26 = vor.u32 %v3615_v15, %v2857_v14  ;;  %v3559_v29 = vld [vmem:[%s4059_s16 + $0x20] sm:$0xf0] }
  0x2c   : > { %1261 = vmatpush.bf16.msra.mxu3 %v2874_v62  ;;  %v3597_v24 = vld [vmem:[#allocation2 + $0x104] sm:$0xf0]  ;;  %v2849_v25 = vld [vmem:[#allocation2 + $0x180] sm:$0xf]  ;;  %v3555_v30 = vld [vmem:[%s4059_s16 + $0x4] sm:$0xf]  ;;  %v2722_v38 = vor.u32 %v3581_v20, %v2721_v19 }
  0x2d   : > { %1208 = vmatpush.bf16.msra.mxu0 %v2674_v4  ;;  %v3613_v27 = vld [vmem:[#allocation2 + $0x184] sm:$0xf0]  ;;  %v2621_v28 = vld [vmem:[%s4059_s16] sm:$0xf]  ;;  %v2969_v32 = vld [vmem:[#allocation2 + $0x270] sm:$0xf]  ;;  %v2786_v39 = vor.u32 %v3597_v24, %v2785_v23 }
  0x2e   : > { %1226 = vmatpush.bf16.msra.mxu1 %v2738_v5  ;;  %v2623_v31 = vld [vmem:[%s4059_s16 + $0x24] sm:$0xf0]  ;;  %v3643_v33 = vld [vmem:[#allocation2 + $0x274] sm:$0xf0]  ;;  %v3033_v36 = vld [vmem:[#allocation2 + $0x2f0] sm:$0xf]  ;;  %v2850_v43 = vor.u32 %v3613_v27, %v2849_v25  ;;  %v4069_v48 = vor.u32 %v3559_v29, %v2621_v28 }
  0x2f   : > { %1244 = vmatpush.bf16.msra.mxu2 %v2802_v6  ;;  %v2629_v35 = vld [vmem:[%s4059_s16 + $0x8] sm:$0xf]  ;;  %v3659_v37 = vld [vmem:[#allocation2 + $0x2f4] sm:$0xf0]  ;;  %v3560_v40 = vld [vmem:[%s4059_s16 + $0x28] sm:$0xf0]  ;;  %v2970_v44 = vor.u32 %v3643_v33, %v2969_v32  ;;  %v4071_v53 = vor.u32 %v3555_v30, %v2623_v31 }
  0x30   : > { %1262 = vmatpush.bf16.msra.mxu3 %v2866_v10  ;;  %v3097_v41 = vld [vmem:[#allocation2 + $0x370] sm:$0xf]  ;;  %v3675_v42 = vld [vmem:[#allocation2 + $0x374] sm:$0xf0]  ;;  %v3556_v45 = vld [vmem:[%s4059_s16 + $0xc] sm:$0xf]  ;;  %v3034_v49 = vor.u32 %v3659_v37, %v3033_v36  ;;  %v4073_v54 = vor.u32 %v3560_v40, %v2629_v35 }
  0x31   : > { %1209 = vmatpush.bf16.msra.mxu0 %v2666_v17  ;;  %v2631_v46 = vld [vmem:[%s4059_s16 + $0x2c] sm:$0xf0]  ;;  %v3691_v50 = vld [vmem:[#allocation2 + $0x3f4] sm:$0xf0]  ;;  %v2961_v51 = vld [vmem:[#allocation2 + $0x260] sm:$0xf]  ;;  %v3098_v57 = vor.u32 %v3675_v42, %v3097_v41 }
  0x32   : > { %1227 = vmatpush.bf16.msra.mxu1 %v2730_v21  ;;  %v3161_v47 = vld [vmem:[#allocation2 + $0x3f0] sm:$0xf]  ;;  %v3641_v52 = vld [vmem:[#allocation2 + $0x264] sm:$0xf0]  ;;  %v3025_v55 = vld [vmem:[#allocation2 + $0x2e0] sm:$0xf]  ;;  %v4075_v58 = vor.u32 %v3556_v45, %v2631_v46 }
  0x33   : > { %1245 = vmatpush.bf16.msra.mxu2 %v2794_v22  ;;  %v3657_v56 = vld [vmem:[#allocation2 + $0x2e4] sm:$0xf0]  ;;  %v3162_v59 = vor.u32 %v3691_v50, %v3161_v47  ;;  %v2962_v60 = vor.u32 %v3641_v52, %v2961_v51  ;;  %v3089_v61 = vld [vmem:[#allocation2 + $0x360] sm:$0xf]  ;;  %v2953_v2 = vld [vmem:[#allocation2 + $0x250] sm:$0xf] }
  0x34   : > { %1263 = vmatpush.bf16.msra.mxu3 %v2858_v26  ;;  %v3673_v62 = vld [vmem:[#allocation2 + $0x364] sm:$0xf0]  ;;  %v3153_v63 = vld [vmem:[#allocation2 + $0x3e0] sm:$0xf]  ;;  %v3026_v0 = vor.u32 %v3657_v56, %v3025_v55  ;;  %v3639_v3 = vld [vmem:[#allocation2 + $0x254] sm:$0xf0] }
  0x35   : > { %1210 = vmatpush.bf16.msra.mxu0 %v2658_v34  ;;  %v3689_v1 = vld [vmem:[#allocation2 + $0x3e4] sm:$0xf0]  ;;  %v3017_v4 = vld [vmem:[#allocation2 + $0x2d0] sm:$0xf]  ;;  %v3655_v5 = vld [vmem:[#allocation2 + $0x2d4] sm:$0xf0]  ;;  %v3090_v6 = vor.u32 %v3673_v62, %v3089_v61  ;;  %v2954_v8 = vor.u32 %v3639_v3, %v2953_v2 }
  0x36   : > { %1228 = vmatpush.bf16.msra.mxu1 %v2722_v38  ;;  %v3154_v7 = vor.u32 %v3689_v1, %v3153_v63  ;;  %v3081_v9 = vld [vmem:[#allocation2 + $0x350] sm:$0xf]  ;;  %v3671_v10 = vld [vmem:[#allocation2 + $0x354] sm:$0xf0]  ;;  %v3018_v12 = vor.u32 %v3655_v5, %v3017_v4  ;;  %v2945_v14 = vld [vmem:[#allocation2 + $0x240] sm:$0xf] }
  0x37   : > { %1246 = vmatpush.bf16.msra.mxu2 %v2786_v39  ;;  %v3145_v11 = vld [vmem:[#allocation2 + $0x3d0] sm:$0xf]  ;;  %v3687_v13 = vld [vmem:[#allocation2 + $0x3d4] sm:$0xf0]  ;;  %v3637_v15 = vld [vmem:[#allocation2 + $0x244] sm:$0xf0]  ;;  %v3082_v19 = vor.u32 %v3671_v10, %v3081_v9 }
  0x38   : > { %1264 = vmatpush.bf16.msra.mxu3 %v2850_v43  ;;  %1211 = vmatmul.bf16.vlgmr.msra.gmra.mxu0 %v4069_v48  ;;  %v3009_v16 = vld [vmem:[#allocation2 + $0x2c0] sm:$0xf]  ;;  %v3653_v17 = vld [vmem:[#allocation2 + $0x2c4] sm:$0xf0]  ;;  %v251_v20 = vld [vmem:[%s4059_s16 + $0x50] sm:$0xff]  ;;  %v3146_v21 = vor.u32 %v3687_v13, %v3145_v11  ;;  %v2946_v22 = vor.u32 %v3637_v15, %v2945_v14  ;;  %vm1616_vm3 = vcmask 1043456  }
  0x39   : > { %1275 = vmatpush.bf16.msrb.mxu0 %v2970_v44  ;;  %1229 = vmatmul.bf16.vlgmr.msra.gmra.mxu1 %v4071_v53  ;;  %v250_v18 = vld [vmem:[%s4059_s16 + $0x48] sm:$0xff]  ;;  %v3073_v23 = vld [vmem:[#allocation2 + $0x340] sm:$0xf]  ;;  %v3010_v26 = vor.u32 %v3653_v17, %v3009_v16  ;;  %v2937_v29 = vld [vmem:[#allocation2 + $0x230] sm:$0xf]  ;;  %v440_v32 = vunpack.c.l.b16 %v251_v20  ;;  %v441_v36 = vunpack.c.h.b16 %v251_v20  ;;  %vm1619_vm4 = vcmask 1044480  }
  0x3a   : > { %1293 = vmatpush.bf16.msrb.mxu1 %v3034_v49  ;;  %1247 = vmatmul.bf16.vlgmr.msra.gmra.mxu2 %v4073_v54  ;;  %v3669_v24 = vld [vmem:[#allocation2 + $0x344] sm:$0xf0]  ;;  %v3137_v25 = vld [vmem:[#allocation2 + $0x3c0] sm:$0xf]  ;;  %v438_v28 = vunpack.c.l.b16 %v250_v18  ;;  %v3635_v30 = vld [vmem:[#allocation2 + $0x234] sm:$0xf0]  ;;  %v439_v31 = vunpack.c.h.b16 %v250_v18 }
  0x3b   : > { %1311 = vmatpush.bf16.msrb.mxu2 %v3098_v57  ;;  %1265 = vmatmul.bf16.vlgmr.msra.gmra.mxu3 %v4075_v58  ;;  %v3685_v27 = vld [vmem:[#allocation2 + $0x3c4] sm:$0xf0]  ;;  %v3001_v33 = vld [vmem:[#allocation2 + $0x2b0] sm:$0xf]  ;;  %v3651_v34 = vld [vmem:[#allocation2 + $0x2b4] sm:$0xf0]  ;;  %v3074_v35 = vor.u32 %v3669_v24, %v3073_v23  ;;  %v2938_v38 = vor.u32 %v3635_v30, %v2937_v29  ;;  %v4087_v49 = vpack.c.b16 %v440_v32, %v440_v32 }
  0x3c   : > { %1329 = vmatpush.bf16.msrb.mxu3 %v3162_v59  ;;  %v3138_v37 = vor.u32 %v3685_v27, %v3137_v25  ;;  %v3065_v39 = vld [vmem:[#allocation2 + $0x330] sm:$0xf]  ;;  %v3667_v40 = vld [vmem:[#allocation2 + $0x334] sm:$0xf0]  ;;  %v4083_v42 = vpack.c.b16 %v438_v28, %v438_v28  ;;  %v3002_v43 = vor.u32 %v3651_v34, %v3001_v33  ;;  %v2929_v45 = vld [vmem:[#allocation2 + $0x220] sm:$0xf]  ;;  %v4085_v47 = vpack.c.b16 %v439_v31, %v439_v31 }
  0x3d   : > { %1276 = vmatpush.bf16.msrb.mxu0 %v2962_v60  ;;  %v3129_v41 = vld [vmem:[#allocation2 + $0x3b0] sm:$0xf]  ;;  %v3683_v44 = vld [vmem:[#allocation2 + $0x3b4] sm:$0xf0]  ;;  %v3633_v46 = vld [vmem:[#allocation2 + $0x224] sm:$0xf0]  ;;  %v3066_v52 = vor.u32 %v3667_v40, %v3065_v39  ;;  %v4089_v55 = vpack.c.b16 %v441_v36, %v441_v36 }
  0x3e   : > { %1294 = vmatpush.bf16.msrb.mxu1 %v3026_v0  ;;  %v2993_v50 = vld [vmem:[#allocation2 + $0x2a0] sm:$0xf]  ;;  %v3649_v51 = vld [vmem:[#allocation2 + $0x2a4] sm:$0xf0]  ;;  %v3130_v56 = vor.u32 %v3683_v44, %v3129_v41  ;;  %v2930_v57 = vor.u32 %v3633_v46, %v2929_v45  ;;  %v2921_v0 = vld [vmem:[#allocation2 + $0x210] sm:$0xf] }
  0x3f   : > { %1312 = vmatpush.bf16.msrb.mxu2 %v3090_v6  ;;  %v3057_v59 = vld [vmem:[#allocation2 + $0x320] sm:$0xf]  ;;  %v3665_v60 = vld [vmem:[#allocation2 + $0x324] sm:$0xf0]  ;;  %v2994_v62 = vor.u32 %v3649_v51, %v2993_v50  ;;  %v3631_v1 = vld [vmem:[#allocation2 + $0x214] sm:$0xf0] }
  0x40   : > { %1330 = vmatpush.bf16.msrb.mxu3 %v3154_v7  ;;  %v3121_v61 = vld [vmem:[#allocation2 + $0x3a0] sm:$0xf]  ;;  %v3681_v63 = vld [vmem:[#allocation2 + $0x3a4] sm:$0xf0]  ;;  %v2985_v2 = vld [vmem:[#allocation2 + $0x290] sm:$0xf]  ;;  %v3058_v4 = vor.u32 %v3665_v60, %v3057_v59 }
  0x41   : > { %1277 = vmatpush.bf16.msrb.mxu0 %v2954_v8  ;;  %v3647_v3 = vld [vmem:[#allocation2 + $0x294] sm:$0xf0]  ;;  %v3049_v5 = vld [vmem:[#allocation2 + $0x310] sm:$0xf]  ;;  %v3122_v7 = vor.u32 %v3681_v63, %v3121_v61  ;;  %v2922_v8 = vor.u32 %v3631_v1, %v2921_v0  ;;  %v2913_v11 = vld [vmem:[#allocation2 + $0x200] sm:$0xf] }
  0x42   : > { %1295 = vmatpush.bf16.msrb.mxu1 %v3018_v12  ;;  %v3663_v6 = vld [vmem:[#allocation2 + $0x314] sm:$0xf0]  ;;  %v3113_v9 = vld [vmem:[#allocation2 + $0x390] sm:$0xf]  ;;  %v2986_v12 = vor.u32 %v3647_v3, %v2985_v2  ;;  %v3629_v13 = vld [vmem:[#allocation2 + $0x204] sm:$0xf0] }
  0x43   : > { %1313 = vmatpush.bf16.msrb.mxu2 %v3082_v19  ;;  %v3679_v10 = vld [vmem:[#allocation2 + $0x394] sm:$0xf0]  ;;  %v2977_v14 = vld [vmem:[#allocation2 + $0x280] sm:$0xf]  ;;  %v3645_v15 = vld [vmem:[#allocation2 + $0x284] sm:$0xf0]  ;;  %v3050_v20 = vor.u32 %v3663_v6, %v3049_v5  ;;  %v2914_v25 = vor.u32 %v3629_v13, %v2913_v11 }
  0x44   : > { %1331 = vmatpush.bf16.msrb.mxu3 %v3146_v21  ;;  %v3041_v16 = vld [vmem:[#allocation2 + $0x300] sm:$0xf]  ;;  %v3661_v17 = vld [vmem:[#allocation2 + $0x304] sm:$0xf0]  ;;  %v3225_v18 = vld [vmem:[#allocation2 + $0x470] sm:$0xf]  ;;  %v3114_v24 = vor.u32 %v3679_v10, %v3113_v9  ;;  %v2978_v29 = vor.u32 %v3645_v15, %v2977_v14 }
  0x45   : > { %1278 = vmatpush.bf16.msrb.mxu0 %v2946_v22  ;;  %v3707_v19 = vld [vmem:[#allocation2 + $0x474] sm:$0xf0]  ;;  %v3105_v21 = vld [vmem:[#allocation2 + $0x380] sm:$0xf]  ;;  %v3578_v22 = vld [vmem:[#allocation2 + $0x74] sm:$0xf]  ;;  %v3042_v39 = vor.u32 %v3661_v17, %v3041_v16 }
  0x46   : > { %1296 = vmatpush.bf16.msrb.mxu1 %v3010_v26  ;;  %v2715_v23 = vld [vmem:[#allocation2 + $0x78] sm:$0xf0]  ;;  %v3677_v26 = vld [vmem:[#allocation2 + $0x384] sm:$0xf0]  ;;  %v2637_v27 = vld [vmem:[%s4059_s16 + $0x10] sm:$0xf]  ;;  %v3226_v32 = vor.u32 %v3707_v19, %v3225_v18 }
  0x47   : > { %1314 = vmatpush.bf16.msrb.mxu2 %v3074_v35  ;;  %v3561_v28 = vld [vmem:[%s4059_s16 + $0x30] sm:$0xf0]  ;;  %v2639_v31 = vld [vmem:[%s4059_s16 + $0x34] sm:$0xf0]  ;;  %v2779_v34 = vld [vmem:[#allocation2 + $0xf8] sm:$0xf0]  ;;  %v2718_v36 = vor.u32 %v3578_v22, %v2715_v23  ;;  %v3106_v44 = vor.u32 %v3677_v26, %v3105_v21 }
  0x48   : > { %1332 = vmatpush.bf16.msrb.mxu3 %v3138_v37  ;;  %1216 = vmatmul.bf16.gmra.mxu0 %v4083_v42  ;;  %v3557_v30 = vld [vmem:[%s4059_s16 + $0x14] sm:$0xf]  ;;  %v2645_v35 = vld [vmem:[%s4059_s16 + $0x18] sm:$0xf]  ;;  %v3562_v40 = vld [vmem:[%s4059_s16 + $0x38] sm:$0xf0] }
  0x49   : > { %1279 = vmatpush.bf16.msrb.mxu0 %v2938_v38  ;;  %1234 = vmatmul.bf16.gmra.mxu1 %v4085_v47  ;;  %v3594_v33 = vld [vmem:[#allocation2 + $0xf4] sm:$0xf]  ;;  %v2843_v38 = vld [vmem:[#allocation2 + $0x178] sm:$0xf0]  ;;  %v3217_v46 = vld [vmem:[#allocation2 + $0x460] sm:$0xf]  ;;  %v4105_v61 = vor.u32 %v3557_v30, %v2639_v31 }
  0x4a   : > { %1297 = vmatpush.bf16.msrb.mxu1 %v3002_v43  ;;  %1252 = vmatmul.bf16.gmra.mxu2 %v4087_v49  ;;  %v3610_v37 = vld [vmem:[#allocation2 + $0x174] sm:$0xf]  ;;  %v3558_v41 = vld [vmem:[%s4059_s16 + $0x1c] sm:$0xf]  ;;  %v2647_v43 = vld [vmem:[%s4059_s16 + $0x3c] sm:$0xf0]  ;;  %v2782_v45 = vor.u32 %v3594_v33, %v2779_v34 }
  0x4b   : > { %1315 = vmatpush.bf16.msrb.mxu2 %v3066_v52  ;;  %1270 = vmatmul.bf16.gmra.mxu3 %v4089_v55  ;;  %v3705_v50 = vld [vmem:[#allocation2 + $0x464] sm:$0xf0]  ;;  %v3576_v51 = vld [vmem:[#allocation2 + $0x64] sm:$0xf]  ;;  %v4103_v52 = vor.u32 %v3561_v28, %v2637_v27  ;;  %v2771_v60 = vld [vmem:[#allocation2 + $0xe8] sm:$0xf0]  ;;  %v4109_v1 = vor.u32 %v3558_v41, %v2647_v43 }
  0x4c   : > { %1333 = vmatpush.bf16.msrb.mxu3 %v3130_v56  ;;  %v2846_v56 = vor.u32 %v3610_v37, %v2843_v38  ;;  %v3592_v59 = vld [vmem:[#allocation2 + $0xe4] sm:$0xf]  ;;  %v2835_v0 = vld [vmem:[#allocation2 + $0x168] sm:$0xf0]  ;;  %v3218_v2 = vor.u32 %v3705_v50, %v3217_v46  ;;  %v3209_v5 = vld [vmem:[#allocation2 + $0x450] sm:$0xf] }
  0x4d   : > { %1280 = vmatpush.bf16.msrb.mxu0 %v2930_v57  ;;  %v2707_v57 = vld [vmem:[#allocation2 + $0x68] sm:$0xf0]  ;;  %v3608_v63 = vld [vmem:[#allocation2 + $0x164] sm:$0xf]  ;;  %v3703_v6 = vld [vmem:[#allocation2 + $0x454] sm:$0xf0] }
  0x4e   : > { %1298 = vmatpush.bf16.msrb.mxu1 %v2994_v62  ;;  %v4107_v62 = vor.u32 %v3562_v40, %v2645_v35  ;;  %v2710_v3 = vor.u32 %v3576_v51, %v2707_v57  ;;  %v2699_v9 = vld [vmem:[#allocation2 + $0x58] sm:$0xf0]  ;;  %v3590_v10 = vld [vmem:[#allocation2 + $0xd4] sm:$0xf]  ;;  %v3210_v14 = vor.u32 %v3703_v6, %v3209_v5  ;;  %v3201_v17 = vld [vmem:[#allocation2 + $0x440] sm:$0xf] }
  0x4f   : > { %1316 = vmatpush.bf16.msrb.mxu2 %v3058_v4  ;;  %v2774_v4 = vor.u32 %v3592_v59, %v2771_v60  ;;  %v2763_v11 = vld [vmem:[#allocation2 + $0xd8] sm:$0xf0]  ;;  %v3701_v18 = vld [vmem:[#allocation2 + $0x444] sm:$0xf0]  ;;  %v3572_v19 = vld [vmem:[#allocation2 + $0x44] sm:$0xf] }
  0x50   : > { %1334 = vmatpush.bf16.msrb.mxu3 %v3122_v7  ;;  %v3574_v7 = vld [vmem:[#allocation2 + $0x54] sm:$0xf]  ;;  %v2827_v13 = vld [vmem:[#allocation2 + $0x158] sm:$0xf0]  ;;  %v2766_v16 = vor.u32 %v3590_v10, %v2763_v11  ;;  %v2691_v21 = vld [vmem:[#allocation2 + $0x48] sm:$0xf0]  ;;  %v3202_v27 = vor.u32 %v3701_v18, %v3201_v17 }
  0x51   : > { %1281 = vmatpush.bf16.msrb.mxu0 %v2922_v8  ;;  %v2838_v8 = vor.u32 %v3608_v63, %v2835_v0  ;;  %v2702_v15 = vor.u32 %v3574_v7, %v2699_v9  ;;  %v3588_v22 = vld [vmem:[#allocation2 + $0xc4] sm:$0xf]  ;;  %v2755_v23 = vld [vmem:[#allocation2 + $0xc8] sm:$0xf0]  ;;  %v252_v26 = vld [vmem:[%s4059_s16 + $0x58] sm:$0xff]  ;;  %vm1622_vm5 = vcmask 1045504  }
  0x52   : > { %1299 = vmatpush.bf16.msrb.mxu1 %v2986_v12  ;;  %v3606_v12 = vld [vmem:[#allocation2 + $0x154] sm:$0xf]  ;;  %v253_v28 = vld [vmem:[%s4059_s16 + $0x60] sm:$0xff]  ;;  %v2758_v30 = vor.u32 %v3588_v22, %v2755_v23  ;;  %v3193_v31 = vld [vmem:[#allocation2 + $0x430] sm:$0xf]  ;;  %v442_v35 = vunpack.c.l.b16 %v252_v26  ;;  %vm1625_vm6 = vcmask 1046528  }
  0x53   : > { %1317 = vmatpush.bf16.msrb.mxu2 %v3050_v20  ;;  %v2830_v20 = vor.u32 %v3606_v12, %v2827_v13  ;;  %v3570_v33 = vld [vmem:[#allocation2 + $0x34] sm:$0xf]  ;;  %v2747_v38 = vld [vmem:[#allocation2 + $0xb8] sm:$0xf0]  ;;  %v444_v40 = vunpack.c.l.b16 %v253_v28  ;;  %v3185_v51 = vld [vmem:[#allocation2 + $0x420] sm:$0xf] }
  0x54   : > { %1335 = vmatpush.bf16.msrb.mxu3 %v3114_v24  ;;  %v3604_v24 = vld [vmem:[#allocation2 + $0x144] sm:$0xf]  ;;  %v3586_v37 = vld [vmem:[#allocation2 + $0xb4] sm:$0xf]  ;;  %v2811_v43 = vld [vmem:[#allocation2 + $0x138] sm:$0xf0]  ;;  %v4117_v59 = vpack.c.b16 %v442_v35, %v442_v35 }
  0x55   : > { %1282 = vmatpush.bf16.msrb.mxu0 %v2914_v25  ;;  %v2819_v25 = vld [vmem:[#allocation2 + $0x148] sm:$0xf0]  ;;  %v3602_v41 = vld [vmem:[#allocation2 + $0x134] sm:$0xf]  ;;  %v2750_v50 = vor.u32 %v3586_v37, %v2747_v38  ;;  %v3568_v57 = vld [vmem:[#allocation2 + $0x24] sm:$0xf] }
  0x56   : > { %1300 = vmatpush.bf16.msrb.mxu1 %v2978_v29  ;;  %v2694_v29 = vor.u32 %v3572_v19, %v2691_v21  ;;  %v2822_v34 = vor.u32 %v3604_v24, %v2819_v25  ;;  %v2814_v60 = vor.u32 %v3602_v41, %v2811_v43  ;;  %v2675_v63 = vld [vmem:[#allocation2 + $0x28] sm:$0xf0]  ;;  %v3584_v0 = vld [vmem:[#allocation2 + $0xa4] sm:$0xf]  ;;  %v3177_v11 = vld [vmem:[#allocation2 + $0x410] sm:$0xf] }
  0x57   : > { %1318 = vmatpush.bf16.msrb.mxu2 %v3042_v39  ;;  %v443_v39 = vunpack.c.h.b16 %v252_v26  ;;  %v3600_v5 = vld [vmem:[#allocation2 + $0x124] sm:$0xf]  ;;  %v2803_v6 = vld [vmem:[#allocation2 + $0x128] sm:$0xf0]  ;;  %v2678_v9 = vor.u32 %v3568_v57, %v2675_v63  ;;  %v3695_v12 = vld [vmem:[#allocation2 + $0x414] sm:$0xf0] }
  0x58   : > { %1336 = vmatpush.bf16.msrb.mxu3 %v3106_v44  ;;  %1283 = vmatmul.bf16.vlgmr.msrb.gmra.mxu0 %v4103_v52  ;;  %v3566_v13 = vld [vmem:[#allocation2 + $0x14] sm:$0xf]  ;;  %v2731_v17 = vld [vmem:[#allocation2 + $0x98] sm:$0xf0]  ;;  %v3169_v21 = vld [vmem:[#allocation2 + $0x400] sm:$0xf] }
  0x59   : > { %1347 = vmatpush.bf16.msra.mxu0 %v3226_v32  ;;  %1301 = vmatmul.bf16.vlgmr.msrb.gmra.mxu1 %v4105_v61  ;;  %v3699_v32 = vld [vmem:[#allocation2 + $0x434] sm:$0xf0]  ;;  %v3598_v18 = vld [vmem:[#allocation2 + $0x114] sm:$0xf]  ;;  %v2795_v19 = vld [vmem:[#allocation2 + $0x118] sm:$0xf0] }
  0x5a   : > { %1365 = vmatpush.bf16.msra.mxu1 %v2718_v36  ;;  %1319 = vmatmul.bf16.vlgmr.msrb.gmra.mxu2 %v4107_v62  ;;  %v2683_v36 = vld [vmem:[#allocation2 + $0x38] sm:$0xf0]  ;;  %v3194_v44 = vor.u32 %v3699_v32, %v3193_v31  ;;  %v3693_v22 = vld [vmem:[#allocation2 + $0x404] sm:$0xf0]  ;;  %v3564_v25 = vld [vmem:[#allocation2 + $0x4] sm:$0xf] }
  0x5b   : > { %1383 = vmatpush.bf16.msra.mxu2 %v2782_v45  ;;  %1337 = vmatmul.bf16.vlgmr.msrb.gmra.mxu3 %v4109_v1  ;;  %v445_v45 = vunpack.c.h.b16 %v253_v28  ;;  %v2686_v46 = vor.u32 %v3570_v33, %v2683_v36  ;;  %v2659_v26 = vld [vmem:[#allocation2 + $0x8] sm:$0xf0]  ;;  %v2798_v28 = vor.u32 %v3598_v18, %v2795_v19  ;;  %v3626_v32 = vld [vmem:[#allocation2 + $0x1f4] sm:$0xf]  ;;  %v2907_v33 = vld [vmem:[#allocation2 + $0x1f8] sm:$0xf0]  ;;  %v3170_v35 = vor.u32 %v3693_v22, %v3169_v21 }
  0x5c   : > { %1401 = vmatpush.bf16.msra.mxu3 %v2846_v56  ;;  %v3697_v56 = vld [vmem:[#allocation2 + $0x424] sm:$0xf0]  ;;  %v2787_v31 = vld [vmem:[#allocation2 + $0x108] sm:$0xf0]  ;;  %v2971_v36 = vld [vmem:[#allocation2 + $0x278] sm:$0xf0] }
  0x5d   : > { %1348 = vmatpush.bf16.msra.mxu0 %v3218_v2  ;;  %v2739_v2 = vld [vmem:[#allocation2 + $0xa8] sm:$0xf0]  ;;  %v4123_v7 = vpack.c.b16 %v445_v45, %v445_v45  ;;  %v3658_v37 = vld [vmem:[#allocation2 + $0x2f4] sm:$0xf]  ;;  %v3035_v38 = vld [vmem:[#allocation2 + $0x2f8] sm:$0xf0]  ;;  %v2910_v45 = vor.u32 %v3626_v32, %v2907_v33 }
  0x5e   : > { %1366 = vmatpush.bf16.msra.mxu1 %v2710_v3  ;;  %v4119_v3 = vpack.c.b16 %v443_v39, %v443_v39  ;;  %v2742_v10 = vor.u32 %v3584_v0, %v2739_v2  ;;  %v2662_v39 = vor.u32 %v3564_v25, %v2659_v26  ;;  %v3674_v41 = vld [vmem:[#allocation2 + $0x374] sm:$0xf]  ;;  %v3099_v43 = vld [vmem:[#allocation2 + $0x378] sm:$0xf0]  ;;  %v2899_v63 = vld [vmem:[#allocation2 + $0x1e8] sm:$0xf0] }
  0x5f   : > { %1384 = vmatpush.bf16.msra.mxu2 %v2774_v4  ;;  %v4121_v4 = vpack.c.b16 %v444_v40, %v444_v40  ;;  %v3102_v57 = vor.u32 %v3674_v41, %v3099_v43  ;;  %v3640_v0 = vld [vmem:[#allocation2 + $0x264] sm:$0xf]  ;;  %v2955_v18 = vld [vmem:[#allocation2 + $0x258] sm:$0xf0]  ;;  %v3654_v19 = vld [vmem:[#allocation2 + $0x2d4] sm:$0xf] }
  0x60   : > { %1402 = vmatpush.bf16.msra.mxu3 %v2838_v8  ;;  %v3186_v8 = vor.u32 %v3697_v56, %v3185_v51  ;;  %v3038_v56 = vor.u32 %v3658_v37, %v3035_v38  ;;  %v3670_v21 = vld [vmem:[#allocation2 + $0x354] sm:$0xf]  ;;  %v3083_v22 = vld [vmem:[#allocation2 + $0x358] sm:$0xf0]  ;;  %v3620_v26 = vld [vmem:[#allocation2 + $0x1c4] sm:$0xf] }
  0x61   : > { %1349 = vmatpush.bf16.msra.mxu0 %v3210_v14  ;;  %v2806_v14 = vor.u32 %v3600_v5, %v2803_v6  ;;  %v2963_v5 = vld [vmem:[#allocation2 + $0x268] sm:$0xf0]  ;;  %v3656_v6 = vld [vmem:[#allocation2 + $0x2e4] sm:$0xf]  ;;  %v254_v33 = vld [vmem:[%s4059_s16 + $0x68] sm:$0xf] }
  0x62   : > { %1367 = vmatpush.bf16.msra.mxu1 %v2702_v15  ;;  %v2667_v15 = vld [vmem:[#allocation2 + $0x18] sm:$0xf0]  ;;  %v3075_v32 = vld [vmem:[#allocation2 + $0x348] sm:$0xf0]  ;;  %v3634_v38 = vld [vmem:[#allocation2 + $0x234] sm:$0xf] }
  0x63   : > { %1385 = vmatpush.bf16.msra.mxu2 %v2766_v16  ;;  %v3582_v16 = vld [vmem:[#allocation2 + $0x94] sm:$0xf]  ;;  %v2670_v23 = vor.u32 %v3566_v13, %v2667_v15  ;;  %v2891_v15 = vld [vmem:[#allocation2 + $0x1d8] sm:$0xf0]  ;;  %s3957_s15 = smov 120   ;;  %s3958_s12 = smov 112  }
  0x64   : > { %1403 = vmatpush.bf16.msra.mxu3 %v2830_v20  ;;  %v3178_v20 = vor.u32 %v3695_v12, %v3177_v11  ;;  %v2734_v24 = vor.u32 %v3582_v16, %v2731_v17  ;;  %v2966_v12 = vor.u32 %v3640_v0, %v2963_v5  ;;  %v3638_v16 = vld [vmem:[#allocation2 + $0x254] sm:$0xf]  ;;  %v2875_v37 = vld [vmem:[#allocation2 + $0x1b8] sm:$0xf0]  ;;  %vm1634_vm7 = vcmask 982016   ;;  %s3959_s6 = smov 8  }
  0x65   : > { %1350 = vmatpush.bf16.msra.mxu0 %v3202_v27  ;;  %v3580_v27 = vld [vmem:[#allocation2 + $0x84] sm:$0xf]  ;;  %v2939_v41 = vld [vmem:[#allocation2 + $0x238] sm:$0xf0]  ;;  %v3650_v43 = vld [vmem:[#allocation2 + $0x2b4] sm:$0xf] }
  0x66   : > { %1368 = vmatpush.bf16.msra.mxu1 %v2694_v29  ;;  %v2723_v29 = vld [vmem:[#allocation2 + $0x88] sm:$0xf0]  ;;  %vm1645_vm8 = vcmask 916480   ;;  %vm2494_vm9 = vcmask 457728   ;;  %vm2500_vm10 = vcmask 392192   ;;  %s3960_s7 = smov 16  }
  0x67   : > { %1386 = vmatpush.bf16.msra.mxu2 %v2758_v30  ;;  %v3596_v30 = vld [vmem:[#allocation2 + $0x104] sm:$0xf]  ;;  %v2726_v40 = vor.u32 %v3580_v27, %v2723_v29  ;;  %v2883_v27 = vld [vmem:[#allocation2 + $0x1c8] sm:$0xf0]  ;;  %v3086_v29 = vor.u32 %v3670_v21, %v3083_v22  ;;  %v2987_v21 = vld [vmem:[#allocation2 + $0x298] sm:$0xf0] }
  0x68   : > { %1404 = vmatpush.bf16.msra.mxu3 %v2822_v34  ;;  %1288 = vmatmul.bf16.gmra.mxu0 %v4117_v59  ;;  %v3642_v34 = vld [vmem:[#allocation2 + $0x274] sm:$0xf]  ;;  %s232_s8 = sand.u32 1, %s3944_s19   ;;  %vm2524_vm11 = vcmask 64512   ;;  %vm2526_vm12 = vcmask 130048   ;;  %s2545_s14 = sshll.u32 %s2541_s11, 4  ;;  %s2546_s14 = int_to_ptr.hbm [resolvable:$true] %s2545_s14 }
  0x69   : > { %1351 = vmatpush.bf16.msra.mxu0 %v3194_v44  ;;  %1306 = vmatmul.bf16.gmra.mxu1 %v4119_v3  ;;  %v2790_v44 = vor.u32 %v3596_v30, %v2787_v31  ;;  %v2974_v51 = vor.u32 %v3642_v34, %v2971_v36  ;;  %v2947_v30 = vld [vmem:[#allocation2 + $0x248] sm:$0xf0]  ;;  %v3618_v36 = vld [vmem:[#allocation2 + $0x1b4] sm:$0xf]  ;;  %s233_s13 = scalar_lea.vmem [#allocation5], %s232_s8  ;;  %vm2528_vm13 = vcmask 195584  }
  0x6a   : > { %1369 = vmatpush.bf16.msra.mxu1 %v2686_v46  ;;  %1324 = vmatmul.bf16.gmra.mxu2 %v4121_v4  ;;  %v2653_v46 = vld [vmem:[%s4059_s16 + $0x20] sm:$0xf]  ;;  %v3011_v31 = vld [vmem:[#allocation2 + $0x2c8] sm:$0xf0]  ;;  %v3662_v22 = vld [vmem:[#allocation2 + $0x314] sm:$0xf] }
  0x6b   : > { %1387 = vmatpush.bf16.msra.mxu2 %v2750_v50  ;;  %1342 = vmatmul.bf16.gmra.mxu3 %v4123_v7  ;;  %v3563_v50 = vld [vmem:[%s4059_s16 + $0x40] sm:$0xf0]  ;;  %vm2530_vm14 = vcmask 253952   ;;  %s3900_s16 = sshra.s32 %s2546_s14, 4  ;;  %s3906_s25 = scalar_lea.hbm %s4479_s5, 2  ;;  %s3901_s16 = int_to_ptr.hbm [resolvable:$true] %s3900_s16 }
  0x6c   : > { %1405 = vmatpush.bf16.msra.mxu3 %v2814_v60  ;;  %v3624_v60 = vld [vmem:[#allocation2 + $0x1e4] sm:$0xf]  ;;  %v4131_v2 = vor.u32 %v3563_v50, %v2653_v46  ;;  %v3067_v46 = vld [vmem:[#allocation2 + $0x338] sm:$0xf0]  ;;  %v2878_v50 = vor.u32 %v3618_v36, %v2875_v37  ;;  %s3902_s22 = scalar_lea.hbm %s3901_s16, 1  ;;  %p3907_p3 = scmp.lt.s32.totalorder %s3901_s16, %s4479_s5 }
  0x6d   : > { %1352 = vmatpush.bf16.msra.mxu0 %v3186_v8  ;;  %v3027_v8 = vld [vmem:[#allocation2 + $0x2e8] sm:$0xf0]  ;;  %v2902_v11 = vor.u32 %v3624_v60, %v2899_v63  ;;  %v3632_v63 = vld [vmem:[#allocation2 + $0x224] sm:$0xf]  ;;  %p3903_p0 = scmp.ne.s32.totalorder %s3901_s16, %s3902_s22  ;;  %p3908_p4 = scmp.lt.s32.totalorder %s3906_s25, %s3902_s22 }
  0x6e   : > { %1370 = vmatpush.bf16.msra.mxu1 %v2678_v9  ;;  %v3672_v9 = vld [vmem:[#allocation2 + $0x364] sm:$0xf]  ;;  %v3030_v13 = vor.u32 %v3656_v6, %v3027_v8  ;;  %v2867_v60 = vld [vmem:[#allocation2 + $0x1a8] sm:$0xf0] }
  0x6f   : > { %1388 = vmatpush.bf16.msra.mxu2 %v2742_v10  ;;  %v3091_v10 = vld [vmem:[#allocation2 + $0x368] sm:$0xf0]  ;;  %v3648_v8 = vld [vmem:[#allocation2 + $0x2a4] sm:$0xf]  ;;  %p3904_p1 = pnand %p3903_p0, %p4029_p5  ;;  %p3909_p7 = por %p3908_p4, %p3907_p3 }
  0x70   : > { %1406 = vmatpush.bf16.msra.mxu3 %v2806_v14  ;;  %v3622_v14 = vld [vmem:[#allocation2 + $0x1d4] sm:$0xf]  ;;  %v3094_v17 = vor.u32 %v3672_v9, %v3091_v10  ;;  %v2931_v6 = vld [vmem:[#allocation2 + $0x228] sm:$0xf0]  ;;  %v3664_v10 = vld [vmem:[#allocation2 + $0x324] sm:$0xf] }
  0x71   : > { %1353 = vmatpush.bf16.msra.mxu0 %v3178_v20  ;;  %v3019_v20 = vld [vmem:[#allocation2 + $0x2d8] sm:$0xf0]  ;;  %v2995_v9 = vld [vmem:[#allocation2 + $0x2a8] sm:$0xf0]  ;;  %p3905_p2 = pneg %p3904_p1 }
  0x72   : > { %1371 = vmatpush.bf16.msra.mxu1 %v2670_v23  ;;  %v2894_v23 = vor.u32 %v3622_v14, %v2891_v15  ;;  %v3022_v25 = vor.u32 %v3654_v19, %v3019_v20  ;;  %v2998_v14 = vor.u32 %v3648_v8, %v2995_v9  ;;  %v3614_v15 = vld [vmem:[#allocation2 + $0x194] sm:$0xf]  ;;  %v2923_v19 = vld [vmem:[#allocation2 + $0x218] sm:$0xf0]  ;;  %v3700_v8 = vld [vmem:[#allocation2 + $0x444] sm:$0xf] }
  0x73   : > { %1389 = vmatpush.bf16.msra.mxu2 %v2734_v24  ;;  %v2958_v24 = vor.u32 %v3638_v16, %v2955_v18  ;;  %v2859_v16 = vld [vmem:[#allocation2 + $0x198] sm:$0xf0]  ;;  %v3646_v20 = vld [vmem:[#allocation2 + $0x294] sm:$0xf]  ;;  %v3203_v9 = vld [vmem:[#allocation2 + $0x448] sm:$0xf0]  ;;  %p3910_p8 = pnand %p3909_p7, %p3905_p2 }
  0x74   : > { %1407 = vmatpush.bf16.msra.mxu3 %v2798_v28  ;;  %v3636_v28 = vld [vmem:[#allocation2 + $0x244] sm:$0xf] }
  0x75   : > { %1354 = vmatpush.bf16.msra.mxu0 %v3170_v35  ;;  %v2950_v34 = vor.u32 %v3636_v28, %v2947_v30  ;;  %v2851_v28 = vld [vmem:[#allocation2 + $0x188] sm:$0xf0] }
  0x76   : > { %1372 = vmatpush.bf16.msra.mxu1 %v2662_v39  ;;  %v2915_v30 = vld [vmem:[#allocation2 + $0x208] sm:$0xf0] }
  0x77   : > { %1390 = vmatpush.bf16.msra.mxu2 %v2726_v40  ;;  %v446_v40 = vunpack.c.l.b16 %v254_v33  ;;  %v3163_v33 = vld [vmem:[#allocation2 + $0x3f8] sm:$0xf0] }
  0x78   : > { %1408 = vmatpush.bf16.msra.mxu3 %v2790_v44  ;;  %1355 = vmatmul.bf16.vlgmr.msra.gmra.mxu0 %v4131_v2  ;;  %v3003_v44 = vld [vmem:[#allocation2 + $0x2b8] sm:$0xf0] }
  0x79   : > { %1419 = vmatpush.bf16.msrb.mxu0 %v2910_v45  ;;  %1373 = vmatmul.bf16.vlgmr.msra.gmra.mxu1 %v4069_v48  ;;  %v3652_v48 = vld [vmem:[#allocation2 + $0x2c4] sm:$0xf]  ;;  %v3666_v45 = vld [vmem:[#allocation2 + $0x334] sm:$0xf]  ;;  %v4138_v0 = vpack.c.b16 %v446_v40, %v446_v40 }
  0x7a   : > { %1437 = vmatpush.bf16.msrb.mxu1 %v2974_v51  ;;  %1391 = vmatmul.bf16.vlgmr.msra.gmra.mxu2 %v4071_v53  ;;  %v3668_v53 = vld [vmem:[#allocation2 + $0x344] sm:$0xf]  ;;  %v3014_v35 = vor.u32 %v3652_v48, %v3011_v31  ;;  %v2942_v51 = vor.u32 %v3634_v38, %v2939_v41  ;;  %v3070_v5 = vor.u32 %v3666_v45, %v3067_v46  ;;  %v3155_v41 = vld [vmem:[#allocation2 + $0x3e8] sm:$0xf0] }
  0x7b   : > { %1455 = vmatpush.bf16.msrb.mxu2 %v3038_v56  ;;  %1409 = vmatmul.bf16.vlgmr.msra.gmra.mxu3 %v4073_v54  ;;  %v2886_v54 = vor.u32 %v3620_v26, %v2883_v27  ;;  %v3078_v39 = vor.u32 %v3668_v53, %v3075_v32  ;;  %v3006_v56 = vor.u32 %v3650_v43, %v3003_v44  ;;  %v3644_v31 = vld [vmem:[#allocation2 + $0x284] sm:$0xf]  ;;  %v3690_v32 = vld [vmem:[#allocation2 + $0x3f4] sm:$0xf]  ;;  %v3219_v44 = vld [vmem:[#allocation2 + $0x468] sm:$0xf0] }
  0x7c   : > { %1473 = vmatpush.bf16.msrb.mxu3 %v3102_v57  ;;  %v3616_v57 = vld [vmem:[#allocation2 + $0x1a4] sm:$0xf]  ;;  %v2990_v27 = vor.u32 %v3646_v20, %v2987_v21  ;;  %v3166_v38 = vor.u32 %v3690_v32, %v3163_v33  ;;  %v3678_v20 = vld [vmem:[#allocation2 + $0x394] sm:$0xf]  ;;  %v3115_v21 = vld [vmem:[#allocation2 + $0x398] sm:$0xf0] }
  0x7d   : > { %1420 = vmatpush.bf16.msrb.mxu0 %v2902_v11  ;;  %v3059_v11 = vld [vmem:[#allocation2 + $0x328] sm:$0xf0]  ;;  %v3660_v53 = vld [vmem:[#allocation2 + $0x304] sm:$0xf] }
  0x7e   : > { %1438 = vmatpush.bf16.msrb.mxu1 %v2966_v12  ;;  %v2870_v12 = vor.u32 %v3616_v57, %v2867_v60  ;;  %v3062_v18 = vor.u32 %v3664_v10, %v3059_v11  ;;  %v3688_v40 = vld [vmem:[#allocation2 + $0x3e4] sm:$0xf]  ;;  %v3211_v57 = vld [vmem:[#allocation2 + $0x458] sm:$0xf0]  ;;  %v3682_v11 = vld [vmem:[#allocation2 + $0x3b4] sm:$0xf] }
  0x7f   : > { %1456 = vmatpush.bf16.msrb.mxu2 %v3030_v13  ;;  %v2934_v13 = vor.u32 %v3632_v63, %v2931_v6  ;;  %v3704_v43 = vld [vmem:[#allocation2 + $0x464] sm:$0xf]  ;;  %v3158_v45 = vor.u32 %v3688_v40, %v3155_v41  ;;  %v3139_v6 = vld [vmem:[#allocation2 + $0x3c8] sm:$0xf0] }
  0x80   : > { %1474 = vmatpush.bf16.msrb.mxu3 %v3094_v17  ;;  %v3630_v17 = vld [vmem:[#allocation2 + $0x214] sm:$0xf]  ;;  %v3222_v46 = vor.u32 %v3704_v43, %v3219_v44 }
  0x81   : > { %1421 = vmatpush.bf16.msrb.mxu0 %v2894_v23  ;;  %v3051_v23 = vld [vmem:[#allocation2 + $0x318] sm:$0xf0]  ;;  %v2926_v26 = vor.u32 %v3630_v17, %v2923_v19  ;;  %v3187_v17 = vld [vmem:[#allocation2 + $0x428] sm:$0xf0] }
  0x82   : > { %1439 = vmatpush.bf16.msrb.mxu1 %v2958_v24  ;;  %v2862_v24 = vor.u32 %v3614_v15, %v2859_v16  ;;  %v3054_v48 = vor.u32 %v3662_v22, %v3051_v23  ;;  %v3123_v15 = vld [vmem:[#allocation2 + $0x3a8] sm:$0xf0]  ;;  %v3696_v16 = vld [vmem:[#allocation2 + $0x424] sm:$0xf]  ;;  %v3694_v22 = vld [vmem:[#allocation2 + $0x414] sm:$0xf] }
  0x83   : > { %1457 = vmatpush.bf16.msrb.mxu2 %v3022_v25  ;;  %v3612_v25 = vld [vmem:[#allocation2 + $0x184] sm:$0xf]  ;;  %v3190_v19 = vor.u32 %v3696_v16, %v3187_v17  ;;  %v3179_v23 = vld [vmem:[#allocation2 + $0x418] sm:$0xf0] }
  0x84   : > { %1475 = vmatpush.bf16.msrb.mxu3 %v3086_v29  ;;  %v3628_v29 = vld [vmem:[#allocation2 + $0x204] sm:$0xf] }
  0x85   : > { %1422 = vmatpush.bf16.msrb.mxu0 %v2886_v54  ;;  %v3706_v54 = vld [vmem:[#allocation2 + $0x474] sm:$0xf] }
  0x86   : > { %1440 = vmatpush.bf16.msrb.mxu1 %v2950_v34  ;;  %v3227_v34 = vld [vmem:[#allocation2 + $0x478] sm:$0xf0] }
  0x87   : > { %1458 = vmatpush.bf16.msrb.mxu2 %v3014_v35  ;;  %v2918_v35 = vor.u32 %v3628_v29, %v2915_v30  ;;  %v3171_v29 = vld [vmem:[#allocation2 + $0x408] sm:$0xf0] }
  0x88   : > { %1476 = vmatpush.bf16.msrb.mxu3 %v3078_v39  ;;  %1360 = vmatmul.bf16.gmra.mxu0 %v4138_v0  ;;  %v3230_v39 = vor.u32 %v3706_v54, %v3227_v34 }
  0x89   : > { %1423 = vmatpush.bf16.msrb.mxu0 %v2878_v50  ;;  %1378 = vmatmul.bf16.gmra.mxu1 %v4083_v42  ;;  %v2979_v42 = vld [vmem:[#allocation2 + $0x288] sm:$0xf0]  ;;  %v3686_v50 = vld [vmem:[#allocation2 + $0x3d4] sm:$0xf] }
  0x8a   : > { %1441 = vmatpush.bf16.msrb.mxu1 %v2942_v51  ;;  %1396 = vmatmul.bf16.gmra.mxu2 %v4085_v47  ;;  %v3043_v47 = vld [vmem:[#allocation2 + $0x308] sm:$0xf0]  ;;  %v2982_v36 = vor.u32 %v3644_v31, %v2979_v42  ;;  %v3147_v51 = vld [vmem:[#allocation2 + $0x3d8] sm:$0xf0] }
  0x8b   : > { %1459 = vmatpush.bf16.msrb.mxu2 %v3006_v56  ;;  %1414 = vmatmul.bf16.gmra.mxu3 %v4087_v49  ;;  %v2854_v49 = vor.u32 %v3612_v25, %v2851_v28  ;;  %v3046_v37 = vor.u32 %v3660_v53, %v3043_v47  ;;  %v3702_v56 = vld [vmem:[#allocation2 + $0x454] sm:$0xf]  ;;  %v3150_v60 = vor.u32 %v3686_v50, %v3147_v51  ;;  %v3692_v28 = vld [vmem:[#allocation2 + $0x404] sm:$0xf] }
  0x8c   : > { %1477 = vmatpush.bf16.msrb.mxu3 %v3070_v5  ;;  %v3214_v63 = vor.u32 %v3702_v56, %v3211_v57  ;;  %v3684_v5 = vld [vmem:[#allocation2 + $0x3c4] sm:$0xf]  ;;  %v3182_v25 = vor.u32 %v3694_v22, %v3179_v23 }
  0x8d   : > { %1424 = vmatpush.bf16.msrb.mxu0 %v2870_v12  ;;  %v3142_v10 = vor.u32 %v3684_v5, %v3139_v6  ;;  %v3131_v12 = vld [vmem:[#allocation2 + $0x3b8] sm:$0xf0] }
  0x8e   : > { %1442 = vmatpush.bf16.msrb.mxu1 %v2934_v13  ;;  %v3698_v13 = vld [vmem:[#allocation2 + $0x434] sm:$0xf] }
  0x8f   : > { %1460 = vmatpush.bf16.msrb.mxu2 %v2998_v14  ;;  %v3680_v14 = vld [vmem:[#allocation2 + $0x3a4] sm:$0xf] }
  0x90   : > { %1478 = vmatpush.bf16.msrb.mxu3 %v3062_v18  ;;  %v3126_v18 = vor.u32 %v3680_v14, %v3123_v15 }
  0x91   : > { %1425 = vmatpush.bf16.msrb.mxu0 %v2862_v24  ;;  %v3118_v24 = vor.u32 %v3678_v20, %v3115_v21 }
  0x92   : > { %1443 = vmatpush.bf16.msrb.mxu1 %v2926_v26  ;;  %v3676_v26 = vld [vmem:[#allocation2 + $0x384] sm:$0xf] }
  0x93   : > { %1461 = vmatpush.bf16.msrb.mxu2 %v2990_v27  ;;  %v3107_v27 = vld [vmem:[#allocation2 + $0x388] sm:$0xf0] }
  0x94   : > { %1479 = vmatpush.bf16.msrb.mxu3 %v3054_v48  ;;  %v3110_v30 = vor.u32 %v3676_v26, %v3107_v27 }
  0x95   : > { %1426 = vmatpush.bf16.msrb.mxu0 %v2854_v49 }
  0x96   : > { %1444 = vmatpush.bf16.msrb.mxu1 %v2918_v35 }
  0x97   : > { %1462 = vmatpush.bf16.msrb.mxu2 %v2982_v36 }
  0x98   : > { %1480 = vmatpush.bf16.msrb.mxu3 %v3046_v37  ;;  %1427 = vmatmul.bf16.vlgmr.msrb.gmra.mxu0 %v4075_v58  ;;  %v3206_v58 = vor.u32 %v3700_v8, %v3203_v9 }
  0x99   : > { %1491 = vmatpush.bf16.msra.mxu0 %v3166_v38  ;;  %1445 = vmatmul.bf16.vlgmr.msrb.gmra.mxu1 %v4103_v52  ;;  %v3195_v52 = vld [vmem:[#allocation2 + $0x438] sm:$0xf0] }
  0x9a   : > { %1509 = vmatpush.bf16.msra.mxu1 %v3230_v39  ;;  %1463 = vmatmul.bf16.vlgmr.msrb.gmra.mxu2 %v4105_v61  ;;  %v3134_v61 = vor.u32 %v3682_v11, %v3131_v12 }
  0x9b   : > { %1481 = vmatmul.bf16.vlgmr.msrb.gmra.mxu3 %v4107_v62  ;;  %v3198_v62 = vor.u32 %v3698_v13, %v3195_v52 }
  0x9d   : > { %1492 = vmatpush.bf16.msra.mxu0 %v3158_v45 }
  0x9e   : > { %1510 = vmatpush.bf16.msra.mxu1 %v3222_v46 }
  0xa1   : > { %1493 = vmatpush.bf16.msra.mxu0 %v3150_v60 }
  0xa2   : > { %1511 = vmatpush.bf16.msra.mxu1 %v3214_v63 }
  0xa5   : > { %1494 = vmatpush.bf16.msra.mxu0 %v3142_v10 }
  0xa6   : > { %1512 = vmatpush.bf16.msra.mxu1 %v3206_v58 }
  0xa8   : > { %1432 = vmatmul.bf16.gmra.mxu0 %v4089_v55  ;;  %v4155_v55 = vld [vmem:[%s4476_s2] sm:$0x3] }
  0xa9   : > { %1495 = vmatpush.bf16.msra.mxu0 %v3134_v61  ;;  %1450 = vmatmul.bf16.gmra.mxu1 %v4117_v59  ;;  %v3174_v59 = vor.u32 %v3692_v28, %v3171_v29 }
  0xaa   : > { %1513 = vmatpush.bf16.msra.mxu1 %v3198_v62  ;;  %1468 = vmatmul.bf16.gmra.mxu2 %v4119_v3  ;;  %v401_v3 = vperm.slane %v4155_v55, 0 }
  0xab   : > { %1486 = vmatmul.bf16.gmra.mxu3 %v4121_v4 }
  0xad   : > { %1496 = vmatpush.bf16.msra.mxu0 %v3126_v18 }
  0xae   : > { %1514 = vmatpush.bf16.msra.mxu1 %v3190_v19 }
  0xb1   : > { %1497 = vmatpush.bf16.msra.mxu0 %v3118_v24 }
  0xb2   : > { %1515 = vmatpush.bf16.msra.mxu1 %v3182_v25 }
  0xb5   : > { %1498 = vmatpush.bf16.msra.mxu0 %v3110_v30  ;;  %v1212_v4 = vpop.f32.mrf.mxu0 }
  0xb6   : > { %1516 = vmatpush.bf16.msra.mxu1 %v3174_v59  ;;  %v1213_v48 = vadd.f32 %v1212_v4, %v401_v3  ;;  %v1230_v31 = vpop.f32.mrf.mxu1 }
  0xb8   : > { %v1231_v42 = vadd.f32 %v1230_v31, %v1213_v48  ;;  %1499 = vmatmul.bf16.vlgmr.msra.gmra.mxu0 %v4109_v1 }
  0xb9   : > { %1517 = vmatmul.bf16.vlgmr.msra.gmra.mxu1 %v4131_v2 }
  0xbd   : > { %v1248_v53 = vpop.f32.mrf.mxu2  ;;  %v1214_v32 = vpop.f32.mrf.mxu0 }
  0xbe   : > { %v1249_v47 = vadd.f32 %v1248_v53, %v1231_v42  ;;  %v1266_v33 = vpop.f32.mrf.mxu3  ;;  %v1215_v49 = vadd.f32 %v1214_v32, %v401_v3  ;;  %v1232_v54 = vpop.f32.mrf.mxu1 }
  0xc0   : > { %v1267_v34 = vadd.f32 %v1266_v33, %v1249_v47  ;;  %v1233_v35 = vadd.f32 %v1232_v54, %v1215_v49 }
  0xc5   : > { %v1250_v36 = vpop.f32.mrf.mxu2  ;;  %v1217_v38 = vpop.f32.mrf.mxu0 }
  0xc6   : > { %v1251_v37 = vadd.f32 %v1250_v36, %v1233_v35  ;;  %v1268_v39 = vpop.f32.mrf.mxu3  ;;  %v1218_v40 = vadd.f32 %v1217_v38, %v401_v3  ;;  %v1235_v41 = vpop.f32.mrf.mxu1 }
  0xc8   : > { %v1269_v43 = vadd.f32 %v1268_v39, %v1251_v37  ;;  %v1236_v44 = vadd.f32 %v1235_v41, %v1218_v40  ;;  %1504 = vmatmul.bf16.gmra.mxu0 %v4123_v7 }
  0xc9   : > { %1522 = vmatmul.bf16.gmra.mxu1 %v4138_v0 }
  0xcd   : > { %v1253_v1 = vpop.f32.mrf.mxu2  ;;  %v1219_v45 = vpop.f32.mrf.mxu0 }
  0xce   : > { %v1254_v2 = vadd.f32 %v1253_v1, %v1236_v44  ;;  %v1271_v46 = vpop.f32.mrf.mxu3  ;;  %v1237_v50 = vpop.f32.mrf.mxu1 }
  0xd0   : > { %v1272_v51 = vadd.f32 %v1271_v46, %v1254_v2 }
  0xd5   : > { %v1255_v56 = vpop.f32.mrf.mxu2  ;;  %v1284_v60 = vpop.f32.mrf.mxu0 }
  0xd6   : > { %v1273_v57 = vpop.f32.mrf.mxu3  ;;  %v1285_v63 = vadd.f32 %v1284_v60, %v1267_v34  ;;  %v1302_v5 = vpop.f32.mrf.mxu1 }
  0xd8   : > { %v1303_v6 = vadd.f32 %v1302_v5, %v1285_v63 }
  0xdd   : > { %v1320_v8 = vpop.f32.mrf.mxu2  ;;  %v1286_v10 = vpop.f32.mrf.mxu0 }
  0xde   : > { %v1321_v9 = vadd.f32 %v1320_v8, %v1303_v6  ;;  %v1338_v58 = vpop.f32.mrf.mxu3  ;;  %v1287_v11 = vadd.f32 %v1286_v10, %v1269_v43  ;;  %v1304_v7 = vpop.f32.mrf.mxu1 }
  0xe0   : > { %v1339_v12 = vadd.f32 %v1338_v58, %v1321_v9  ;;  %v1305_v0 = vadd.f32 %v1304_v7, %v1287_v11 }
  0xe5   : > { %v1322_v13 = vpop.f32.mrf.mxu2  ;;  %v1289_v61 = vpop.f32.mrf.mxu0 }
  0xe6   : > { %v1323_v52 = vadd.f32 %v1322_v13, %v1305_v0  ;;  %v1340_v62 = vpop.f32.mrf.mxu3  ;;  %v1290_v14 = vadd.f32 %v1289_v61, %v1272_v51  ;;  %v1307_v15 = vpop.f32.mrf.mxu1 }
  0xe8   : > { %v1341_v16 = vadd.f32 %v1340_v62, %v1323_v52  ;;  %v1308_v17 = vadd.f32 %v1307_v15, %v1290_v14  ;;  %v402_v15 = vperm.slane %v4155_v55, 1 }
  0xed   : > { %v1325_v18 = vpop.f32.mrf.mxu2  ;;  %v1291_v20 = vpop.f32.mrf.mxu0 }
  0xee   : > { %v1326_v19 = vadd.f32 %v1325_v18, %v1308_v17  ;;  %v1343_v21 = vpop.f32.mrf.mxu3  ;;  %v1309_v22 = vpop.f32.mrf.mxu1 }
  0xf0   : > { %v1344_v23 = vadd.f32 %v1343_v21, %v1326_v19 }
  0xf5   : > { %v1327_v24 = vpop.f32.mrf.mxu2  ;;  %v1356_v26 = vpop.f32.mrf.mxu0 }
  0xf6   : > { %v1345_v25 = vpop.f32.mrf.mxu3  ;;  %v1357_v27 = vadd.f32 %v1356_v26, %v1339_v12  ;;  %v1374_v28 = vpop.f32.mrf.mxu1 }
  0xf7   : > { %v1375_v17 = vadd.f32 %v1374_v28, %v402_v15 }
  0xf8   : > { %v1527_v29 = vmax.f32 %v1357_v27, 0.0 }
  0xfa   : > { %v1535_v30 = vrot.slane %v1527_v29, 1  ;;  %v1541_v3 = vrot.slane %v1527_v29, 2 }
  0xfc   : > { %v1539_v59 = vmax.f32 %v1527_v29, %v1535_v30 }
  0xfd   : > { %v1392_v4 = vpop.f32.mrf.mxu2  ;;  %v1358_v48 = vpop.f32.mrf.mxu0 }
  0xfe   : > { %v1410_v31 = vpop.f32.mrf.mxu3  ;;  %v1545_v42 = vmax.f32 %v1539_v59, %v1541_v3  ;;  %v1359_v53 = vadd.f32 %v1358_v48, %v1341_v16  ;;  %v1376_v47 = vpop.f32.mrf.mxu1  ;;  %v1393_v18 = vadd.f32 %v1392_v4, %v1375_v17 }
  0xff   : > { %v1377_v24 = vadd.f32 %v1376_v47, %v402_v15 }
 0x100   : > { %v1573_v32 = vrot.slane %v1545_v42, 1  ;;  %v1529_v33 = vmax.f32 %v1359_v53, 0.0  ;;  %v1577_v34 = vrot.slane %v1545_v42, 2 }
 0x102   : > { %v1549_v49 = vrot.slane %v1529_v33, 2  ;;  %v1555_v54 = vrot.slane %v1529_v33, 1  ;;  %v1608_v35 = vsel %vm1607_vm0, %v1545_v42, %v1573_v32 }
 0x103   : > { %v1611_v2 = vsel %vm1610_vm1, %v1608_v35, %v1577_v34 }
 0x104   : > { %v1553_v36 = vmax.f32 %v1539_v59, %v1549_v49  ;;  %v1559_v38 = vmax.f32 %v1529_v33, %v1555_v54 }
 0x105   : > { %v1394_v37 = vpop.f32.mrf.mxu2  ;;  %v1361_v39 = vpop.f32.mrf.mxu0 }
 0x106   : > { %v1412_v40 = vpop.f32.mrf.mxu3  ;;  %v1583_v41 = vrot.slane %v1553_v36, 3  ;;  %v1362_v43 = vadd.f32 %v1361_v39, %v1344_v23  ;;  %v1561_v44 = vmax.f32 %v1559_v38, %v1549_v49  ;;  %v1379_v1 = vpop.f32.mrf.mxu1  ;;  %v1411_v23 = vadd.f32 %v1410_v31, %v1393_v18 }
 0x107   : > { %v1395_v26 = vadd.f32 %v1394_v37, %v1377_v24  ;;  %v1380_v53 = vadd.f32 %v1379_v1, %v402_v15  ;;  %v3729_v24 = vld [vmem:[%s4477_s3 + $0xa8] sm:$0xff] }
 0x108   : > { %v1614_v45 = vsel %vm1613_vm2, %v1611_v2, %v1583_v41  ;;  %v1531_v46 = vmax.f32 %v1362_v43, 0.0  ;;  %v1589_v50 = vrot.slane %v1561_v44, 4  ;;  %v1593_v51 = vrot.slane %v1561_v44, 5 }
 0x109   : > { %v1597_v57 = vrot.slane %v1561_v44, 6  ;;  %v1413_v48 = vadd.f32 %v1412_v40, %v1395_v26  ;;  %v3715_v40 = vld [vmem:[%s4477_s3 + $0x38] sm:$0xff] }
 0x10a   : > { %v1565_v56 = vrot.slane %v1531_v46, 2  ;;  %v1617_v60 = vsel %vm1616_vm3, %v1614_v45, %v1589_v50  ;;  %v3723_v44 = vld [vmem:[%s4477_s3 + $0x78] sm:$0xff]  ;;  %2345 = vmatpush.bf16.msra.mxu2 %v3715_v40 }
 0x10b   : > { %v1620_v63 = vsel %vm1619_vm4, %v1617_v60, %v1593_v51  ;;  %2358 = vmatpush.bf16.msra.mxu3 %v3723_v44  ;;  %v3714_v51 = vld [vmem:[%s4477_s3 + $0x30] sm:$0xff]  ;;  %v3747_v40 = vld [vmem:[%s4477_s3 + $0x138] sm:$0xff] }
 0x10c   : > { %v1569_v5 = vmax.f32 %v1559_v38, %v1565_v56  ;;  %v1623_v8 = vsel %vm1622_vm5, %v1620_v63, %v1597_v57  ;;  %v3722_v56 = vld [vmem:[%s4477_s3 + $0x70] sm:$0xff]  ;;  %v3755_v44 = vld [vmem:[%s4477_s3 + $0x178] sm:$0xff] }
 0x10d   : > { %v1397_v6 = vpop.f32.mrf.mxu2  ;;  %v1363_v9 = vpop.f32.mrf.mxu0 }
 0x10e   : > { %v1415_v10 = vpop.f32.mrf.mxu3  ;;  %v1603_v58 = vrot.slane %v1569_v5, 7  ;;  %v1381_v11 = vpop.f32.mrf.mxu1  ;;  %v1398_v32 = vadd.f32 %v1397_v6, %v1380_v53  ;;  %v3731_v5 = vld [vmem:[%s4477_s3 + $0xb8] sm:$0xff]  ;;  %2346 = vmatpush.bf16.msra.mxu2 %v3714_v51  ;;  %v3753_v51 = vld [vmem:[%s4477_s3 + $0x168] sm:$0xff] }
 0x10f   : > { %v3739_v6 = vld [vmem:[%s4477_s3 + $0xf8] sm:$0xff]  ;;  %2359 = vmatpush.bf16.msra.mxu3 %v3722_v56  ;;  %2371 = vmatpush.bf16.msrb.mxu0 %v3731_v5  ;;  %v3726_v56 = vld [vmem:[%s4477_s3 + $0x90] sm:$0xff]  ;;  %v3725_v5 = vld [vmem:[%s4477_s3 + $0x88] sm:$0xff] }
 0x110   : > { %v4169_v7 = vsel %vm1625_vm6, %v1623_v8, %v1603_v58  ;;  %v1416_v47 = vadd.f32 %v1415_v10, %v1398_v32  ;;  %v3713_v10 = vld [vmem:[%s4477_s3 + $0x28] sm:$0xff]  ;;  %2384 = vmatpush.bf16.msrb.mxu1 %v3739_v6  ;;  %v3736_v32 = vld [vmem:[%s4477_s3 + $0xe0] sm:$0xff] }
 0x111   : > { %v3721_v58 = vld [vmem:[%s4477_s3 + $0x68] sm:$0xff] }
 0x112   : > { %2347 = vmatpush.bf16.msra.mxu2 %v3713_v10  ;;  %v3733_v6 = vld [vmem:[%s4477_s3 + $0xc8] sm:$0xff]  ;;  %v3724_v10 = vld [vmem:[%s4477_s3 + $0x80] sm:$0xff] }
 0x113   : > { %2360 = vmatpush.bf16.msra.mxu3 %v3721_v58  ;;  %v3732_v58 = vld [vmem:[%s4477_s3 + $0xc0] sm:$0xff] }
 0x115   : > { %v1399_v12 = vpop.f32.mrf.mxu2  ;;  %v1428_v13 = vpop.f32.mrf.mxu0 }
 0x116   : > { %v1417_v0 = vpop.f32.mrf.mxu3  ;;  %v1446_v52 = vpop.f32.mrf.mxu1  ;;  %v1429_v25 = vadd.f32 %v1428_v13, %v1411_v23  ;;  %v3730_v13 = vld [vmem:[%s4477_s3 + $0xb0] sm:$0xff] }
 0x117   : > { %2372 = vmatpush.bf16.msrb.mxu0 %v3730_v13  ;;  %v3771_v13 = vld [vmem:[%s4477_s3 + $0x1f8] sm:$0xff] }
 0x118   : > { %v1447_v59 = vadd.f32 %v1446_v52, %v1429_v25  ;;  %v3738_v52 = vld [vmem:[%s4477_s3 + $0xf0] sm:$0xff]  ;;  %v3737_v25 = vld [vmem:[%s4477_s3 + $0xe8] sm:$0xff] }
 0x119   : > { %2385 = vmatpush.bf16.msrb.mxu1 %v3738_v52  ;;  %v3741_v52 = vld [vmem:[%s4477_s3 + $0x108] sm:$0xff] }
 0x11b   : > { %2373 = vmatpush.bf16.msrb.mxu0 %v3729_v24  ;;  %v3758_v24 = vld [vmem:[%s4477_s3 + $0x190] sm:$0xff] }
 0x11d   : > { %v1464_v61 = vpop.f32.mrf.mxu2  ;;  %v1430_v62 = vpop.f32.mrf.mxu0  ;;  %2386 = vmatpush.bf16.msrb.mxu1 %v3737_v25  ;;  %v3766_v25 = vld [vmem:[%s4477_s3 + $0x1d0] sm:$0xff] }
 0x11e   : > { %v1482_v14 = vpop.f32.mrf.mxu3  ;;  %v1448_v16 = vpop.f32.mrf.mxu1  ;;  %v1465_v42 = vadd.f32 %v1464_v61, %v1447_v59  ;;  %v1431_v55 = vadd.f32 %v1430_v62, %v1413_v48  ;;  %v3719_v48 = vld [vmem:[%s4477_s3 + $0x58] sm:$0xff] }
 0x120   : > { %v1483_v28 = vadd.f32 %v1482_v14, %v1465_v42  ;;  %v1449_v54 = vadd.f32 %v1448_v16, %v1431_v55  ;;  %v3728_v55 = vld [vmem:[%s4477_s3 + $0xa0] sm:$0xff] }
 0x121   : > { %2374 = vmatpush.bf16.msrb.mxu0 %v3728_v55  ;;  %2387 = vmatpush.bf16.msrb.mxu1 %v3736_v32  ;;  %v3756_v55 = vld [vmem:[%s4477_s3 + $0x180] sm:$0xff] }
 0x122   : > { %v3764_v32 = vld [vmem:[%s4477_s3 + $0x1c0] sm:$0xff] }
 0x125   : > { %v1466_v19 = vpop.f32.mrf.mxu2  ;;  %v1433_v20 = vpop.f32.mrf.mxu0 }
 0x126   : > { %v1484_v21 = vpop.f32.mrf.mxu3  ;;  %v1451_v22 = vpop.f32.mrf.mxu1  ;;  %v1467_v35 = vadd.f32 %v1466_v19, %v1449_v54  ;;  %v1434_v37 = vadd.f32 %v1433_v20, %v1416_v47  ;;  %v3712_v19 = vld [vmem:[%s4477_s3 + $0x20] sm:$0xff] }
 0x127   : > { %v3720_v20 = vld [vmem:[%s4477_s3 + $0x60] sm:$0xff]  ;;  %2348 = vmatpush.bf16.msra.mxu2 %v3712_v19 }
 0x128   : > { %v1485_v39 = vadd.f32 %v1484_v21, %v1467_v35  ;;  %v1452_v1 = vadd.f32 %v1451_v22, %v1434_v37  ;;  %2361 = vmatpush.bf16.msra.mxu3 %v3720_v20  ;;  %v3760_v19 = vld [vmem:[%s4477_s3 + $0x1a0] sm:$0xff] }
 0x129   : > { %v3768_v20 = vld [vmem:[%s4477_s3 + $0x1e0] sm:$0xff] }
 0x12c   : > { %2362 = vmatpush.bf16.msra.mxu3 %v3719_v48 }
 0x12d   : > { %v1469_v27 = vpop.f32.mrf.mxu2  ;;  %v1435_v29 = vpop.f32.mrf.mxu0 }
 0x12e   : > { %v1487_v30 = vpop.f32.mrf.mxu3  ;;  %v1453_v3 = vpop.f32.mrf.mxu1  ;;  %v1470_v57 = vadd.f32 %v1469_v27, %v1452_v1  ;;  %v3746_v1 = vld [vmem:[%s4477_s3 + $0x130] sm:$0xff] }
 0x12f   : > { %v3711_v3 = vld [vmem:[%s4477_s3 + $0x18] sm:$0xff] }
 0x130   : > { %v1488_v11 = vadd.f32 %v1487_v30, %v1470_v57  ;;  %2349 = vmatpush.bf16.msra.mxu2 %v3711_v3  ;;  %v3734_v57 = vld [vmem:[%s4477_s3 + $0xd0] sm:$0xff] }
 0x135   : > { %v1471_v4 = vpop.f32.mrf.mxu2  ;;  %v1500_v33 = vpop.f32.mrf.mxu0 }
 0x136   : > { %v1489_v49 = vpop.f32.mrf.mxu3  ;;  %v1501_v34 = vadd.f32 %v1500_v33, %v1483_v28  ;;  %v1518_v31 = vpop.f32.mrf.mxu1 }
 0x138   : > { %v1519_v36 = vadd.f32 %v1518_v31, %v1501_v34  ;;  %v3710_v34 = vld [vmem:[%s4477_s3 + $0x10] sm:$0xff] }
 0x139   : > { %v3718_v31 = vld [vmem:[%s4477_s3 + $0x50] sm:$0xff]  ;;  %2350 = vmatpush.bf16.msra.mxu2 %v3710_v34 }
 0x13a   : > { %v1528_v38 = vmax.f32 %v1519_v36, 0.0  ;;  %2363 = vmatpush.bf16.msra.mxu3 %v3718_v31 }
 0x13c   : > { %v1536_v41 = vrot.slane %v1528_v38, 1  ;;  %v1542_v45 = vrot.slane %v1528_v38, 2 }
 0x13d   : > { %v1502_v43 = vpop.f32.mrf.mxu0 }
 0x13e   : > { %v1540_v2 = vmax.f32 %v1528_v38, %v1536_v41  ;;  %v1503_v46 = vadd.f32 %v1502_v43, %v1485_v39  ;;  %v1520_v50 = vpop.f32.mrf.mxu1  ;;  %v3709_v38 = vld [vmem:[%s4477_s3 + $0x8] sm:$0xff]  ;;  %v3708_v41 = vld [vmem:[%s4477_s3] sm:$0xff] }
 0x13f   : > { %v3717_v39 = vld [vmem:[%s4477_s3 + $0x48] sm:$0xff]  ;;  %2351 = vmatpush.bf16.msra.mxu2 %v3709_v38  ;;  %v3716_v43 = vld [vmem:[%s4477_s3 + $0x40] sm:$0xff] }
 0x140   : > { %v1546_v60 = vmax.f32 %v1540_v2, %v1542_v45  ;;  %v1521_v63 = vadd.f32 %v1520_v50, %v1503_v46  ;;  %2364 = vmatpush.bf16.msra.mxu3 %v3717_v39  ;;  %v3727_v45 = vld [vmem:[%s4477_s3 + $0x98] sm:$0xff]  ;;  %v3745_v50 = vld [vmem:[%s4477_s3 + $0x128] sm:$0xff] }
 0x141   : > { %v3735_v46 = vld [vmem:[%s4477_s3 + $0xd8] sm:$0xff]  ;;  %2375 = vmatpush.bf16.msrb.mxu0 %v3727_v45 }
 0x142   : > { %v1574_v8 = vrot.slane %v1546_v60, 1  ;;  %v1530_v9 = vmax.f32 %v1521_v63, 0.0  ;;  %v1578_v61 = vrot.slane %v1546_v60, 2  ;;  %2388 = vmatpush.bf16.msrb.mxu1 %v3735_v46  ;;  %v3752_v63 = vld [vmem:[%s4477_s3 + $0x160] sm:$0xff]  ;;  %v3778_v46 = vld [vmem:[%s4477_s3 + $0x230] sm:$0xff] }
 0x143   : > { %2352 = vmatpush.bf16.msra.mxu2 %v3708_v41 }
 0x144   : > { %v1550_v12 = vrot.slane %v1530_v9, 2  ;;  %v1556_v0 = vrot.slane %v1530_v9, 1  ;;  %v1609_v14 = vsel %vm1607_vm0, %v1546_v60, %v1574_v8  ;;  %2365 = vmatpush.bf16.msra.mxu3 %v3716_v43  ;;  %v3744_v60 = vld [vmem:[%s4477_s3 + $0x120] sm:$0xff]  ;;  %v3743_v8 = vld [vmem:[%s4477_s3 + $0x118] sm:$0xff] }
 0x145   : > { %v1505_v62 = vpop.f32.mrf.mxu0  ;;  %v1612_v26 = vsel %vm1610_vm1, %v1609_v14, %v1578_v61  ;;  %2376 = vmatpush.bf16.msrb.mxu0 %v3726_v56  ;;  %v3749_v61 = vld [vmem:[%s4477_s3 + $0x148] sm:$0xff]  ;;  %v3770_v14 = vld [vmem:[%s4477_s3 + $0x1f0] sm:$0xff]  ;;  %v3779_v43 = vld [vmem:[%s4477_s3 + $0x238] sm:$0xff] }
 0x146   : > { %v1554_v15 = vmax.f32 %v1540_v2, %v1550_v12  ;;  %v1506_v16 = vadd.f32 %v1505_v62, %v1488_v11  ;;  %v1523_v17 = vpop.f32.mrf.mxu1  ;;  %v1560_v18 = vmax.f32 %v1530_v9, %v1556_v0  ;;  %v3754_v2 = vld [vmem:[%s4477_s3 + $0x170] sm:$0xff]  ;;  %2389 = vmatpush.bf16.msrb.mxu1 %v3734_v57  ;;  %v3751_v9 = vld [vmem:[%s4477_s3 + $0x158] sm:$0xff] }
 0x147   : > { %2397 = vmatpush.bf16.msrb.mxu2 %v3747_v40  ;;  %v3742_v11 = vld [vmem:[%s4477_s3 + $0x110] sm:$0xff]  ;;  %v3763_v0 = vld [vmem:[%s4477_s3 + $0x1b8] sm:$0xff] }
 0x148   : > { %v1584_v21 = vrot.slane %v1554_v15, 3  ;;  %v1524_v22 = vadd.f32 %v1523_v17, %v1506_v16  ;;  %v1562_v23 = vmax.f32 %v1560_v18, %v1550_v12  ;;  %2410 = vmatpush.bf16.msrb.mxu3 %v3755_v44  ;;  %v3750_v12 = vld [vmem:[%s4477_s3 + $0x150] sm:$0xff]  ;;  %v3740_v15 = vld [vmem:[%s4477_s3 + $0x100] sm:$0xff]  ;;  %v3761_v17 = vld [vmem:[%s4477_s3 + $0x1a8] sm:$0xff] }
 0x149   : > { %2377 = vmatpush.bf16.msrb.mxu0 %v3725_v5  ;;  %v3762_v62 = vld [vmem:[%s4477_s3 + $0x1b0] sm:$0xff]  ;;  %v3748_v16 = vld [vmem:[%s4477_s3 + $0x140] sm:$0xff] }
 0x14a   : > { %v1615_v27 = vsel %vm1613_vm2, %v1612_v26, %v1584_v21  ;;  %v1532_v29 = vmax.f32 %v1524_v22, 0.0  ;;  %v1590_v30 = vrot.slane %v1562_v23, 4  ;;  %v1594_v59 = vrot.slane %v1562_v23, 5  ;;  %2390 = vmatpush.bf16.msrb.mxu1 %v3733_v6  ;;  %v3759_v21 = vld [vmem:[%s4477_s3 + $0x198] sm:$0xff]  ;;  %v3777_v6 = vld [vmem:[%s4477_s3 + $0x228] sm:$0xff] }
 0x14b   : > { %v1598_v54 = vrot.slane %v1562_v23, 6  ;;  %2398 = vmatpush.bf16.msrb.mxu2 %v3746_v1  ;;  %v3767_v22 = vld [vmem:[%s4477_s3 + $0x1d8] sm:$0xff] }
 0x14c   : > { %v1566_v42 = vrot.slane %v1532_v29, 2  ;;  %v1618_v53 = vsel %vm1616_vm3, %v1615_v27, %v1590_v30  ;;  %2411 = vmatpush.bf16.msrb.mxu3 %v3754_v2  ;;  %v3757_v29 = vld [vmem:[%s4477_s3 + $0x188] sm:$0xff] }
 0x14d   : > { %v1507_v28 = vpop.f32.mrf.mxu0  ;;  %v1621_v49 = vsel %vm1619_vm4, %v1618_v53, %v1594_v59  ;;  %2378 = vmatpush.bf16.msrb.mxu0 %v3724_v10  ;;  %v3765_v30 = vld [vmem:[%s4477_s3 + $0x1c8] sm:$0xff]  ;;  %v3784_v10 = vld [vmem:[%s4477_s3 + $0x260] sm:$0xff] }
 0x14e   : > { %v1570_v4 = vmax.f32 %v1560_v18, %v1566_v42  ;;  %v1525_v33 = vpop.f32.mrf.mxu1  ;;  %v1624_v35 = vsel %vm1622_vm5, %v1621_v49, %v1598_v54  ;;  %2391 = vmatpush.bf16.msrb.mxu1 %v3732_v58  ;;  %v3769_v18 = vld [vmem:[%s4477_s3 + $0x1e8] sm:$0xff]  ;;  %v3775_v58 = vld [vmem:[%s4477_s3 + $0x218] sm:$0xff] }
 0x14f   : > { %2399 = vmatpush.bf16.msrb.mxu2 %v3745_v50  ;;  %v3786_v50 = vld [vmem:[%s4477_s3 + $0x270] sm:$0xff] }
 0x150   : > { %v1604_v47 = vrot.slane %v1570_v4, 7  ;;  %2412 = vmatpush.bf16.msrb.mxu3 %v3753_v51 }
 0x151   : > { %2423 = vmatpush.bf16.msra.mxu0 %v3763_v0 }
 0x152   : > { %v4239_v36 = vsel %vm1625_vm6, %v1624_v35, %v1604_v47  ;;  %2436 = vmatpush.bf16.msra.mxu1 %v3771_v13  ;;  %v3774_v13 = vld [vmem:[%s4477_s3 + $0x210] sm:$0xff] }
 0x153   : > { %v3845_v37 = vpack.i.bf16 %v4239_v36, %v4169_v7  ;;  %2400 = vmatpush.bf16.msrb.mxu2 %v3744_v60 }
 0x154   : > { %2413 = vmatpush.bf16.msrb.mxu3 %v3752_v63 }
 0x155   : > { %3846 = vrot.lane.b32.xlu0 %v3845_v37, %s3957_s15  ;;  %2424 = vmatpush.bf16.msra.mxu0 %v3762_v62 }
 0x156   : > { %2437 = vmatpush.bf16.msra.mxu1 %v3770_v14 }
 0x157   : > { %2401 = vmatpush.bf16.msrb.mxu2 %v3743_v8  ;;  %v3785_v8 = vld [vmem:[%s4477_s3 + $0x268] sm:$0xff] }
 0x158   : > { %2414 = vmatpush.bf16.msrb.mxu3 %v3751_v9  ;;  %v3776_v9 = vld [vmem:[%s4477_s3 + $0x220] sm:$0xff] }
 0x159   : > { %2425 = vmatpush.bf16.msra.mxu0 %v3761_v17 }
 0x15a   : > { %2438 = vmatpush.bf16.msra.mxu1 %v3769_v18  ;;  %v3773_v18 = vld [vmem:[%s4477_s3 + $0x208] sm:$0xff] }
 0x15b   : > { %2402 = vmatpush.bf16.msrb.mxu2 %v3742_v11  ;;  %v3783_v11 = vld [vmem:[%s4477_s3 + $0x258] sm:$0xff] }
 0x15c   : > { %2415 = vmatpush.bf16.msrb.mxu3 %v3750_v12 }
 0x15d   : > { %3851 = vrot.lane.b32.xlu0 %v3845_v37, %s3958_s12  ;;  %2426 = vmatpush.bf16.msra.mxu0 %v3760_v19  ;;  %v3781_v19 = vld [vmem:[%s4477_s3 + $0x248] sm:$0xff] }
 0x15e   : > { %2439 = vmatpush.bf16.msra.mxu1 %v3768_v20  ;;  %v3772_v20 = vld [vmem:[%s4477_s3 + $0x200] sm:$0xff] }
 0x15f   : > { %2403 = vmatpush.bf16.msrb.mxu2 %v3741_v52  ;;  %v3782_v52 = vld [vmem:[%s4477_s3 + $0x250] sm:$0xff] }
 0x160   : > { %2416 = vmatpush.bf16.msrb.mxu3 %v3749_v61 }
 0x161   : > { %2427 = vmatpush.bf16.msra.mxu0 %v3759_v21  ;;  %v3780_v21 = vld [vmem:[%s4477_s3 + $0x240] sm:$0xff] }
 0x162   : > { %2440 = vmatpush.bf16.msra.mxu1 %v3767_v22 }
 0x163   : > { %2404 = vmatpush.bf16.msrb.mxu2 %v3740_v15 }
 0x164   : > { %2417 = vmatpush.bf16.msrb.mxu3 %v3748_v16 }
 0x165   : > { %2428 = vmatpush.bf16.msra.mxu0 %v3758_v24 }
 0x166   : > { %2441 = vmatpush.bf16.msra.mxu1 %v3766_v25 }
 0x169   : > { %2429 = vmatpush.bf16.msra.mxu0 %v3757_v29 }
 0x16a   : > { %2442 = vmatpush.bf16.msra.mxu1 %v3765_v30 }
 0x16d   : > { %2430 = vmatpush.bf16.msra.mxu0 %v3756_v55 }
 0x16e   : > { %2443 = vmatpush.bf16.msra.mxu1 %v3764_v32 }
 0x1c7   : > { %v3847_v23 = vpop.permute.xlu0 %3846 }
 0x1c8   : > { %v3849_v26 = vunpack.i.h.bf16 %v3847_v23  ;;  %v3848_v27 = vunpack.i.l.bf16 %v3847_v23 }
 0x1ca   : > { %v1638_v59 = vsel %vm1634_vm7, %v3849_v26, 0.0  ;;  %v1635_v3 = vsel %vm1634_vm7, %v3848_v27, %v3849_v26  ;;  %v3855_v26 = vld [vmem:[%s4478_s4] ss:$0 sm:$0xff] }
 0x1cb   : > { %v1640_v28 = vmax.f32 %v4239_v36, %v1638_v59  ;;  %v1639_v4 = vmax.f32 %v4169_v7, %v1635_v3  ;;  %v3787_v7 = vld [vmem:[%s4477_s3 + $0x278] sm:$0xff] }
 0x1cf   : > { %v3852_v48 = vpop.permute.xlu0 %3851 }
 0x1d0   : > { %v3854_v42 = vunpack.i.h.bf16 %v3852_v48  ;;  %v3853_v53 = vunpack.i.l.bf16 %v3852_v48 }
 0x1d2   : > { %v1649_v33 = vsel %vm1645_vm8, %v3854_v42, 0.0  ;;  %v1646_v49 = vsel %vm1645_vm8, %v3853_v53, %v3854_v42 }
 0x1d3   : > { %v1650_v54 = vmax.f32 %v1639_v4, %v1646_v49  ;;  %v1651_v34 = vmax.f32 %v1640_v28, %v1649_v33 }
 0x1d5   : > { %v1652_v31 = vpack.c.bf16 %v1651_v34, %v1650_v54 }
 0x1d7   : > { %v1654_v47 = vunpack.c.l.b16 %v1652_v31  ;;  %v1655_v35 = vunpack.c.h.b16 %v1652_v31 }
 0x1d9   : > { %v1656_v37 = vpack.c.b16 %v1654_v47, %v1654_v47  ;;  %v1657_v38 = vpack.c.b16 %v1655_v35, %v1655_v35 }
 0x1db   : > { %v1658_v39 = vrot.slane %v1656_v37, 7  ;;  %v1659_v41 = vrot.slane %v1657_v38, 7 }
 0x1dd   : > { %v1662_v36 = vsel %vm1607_vm0, 0, %v1658_v39  ;;  %v1664_v40 = vsel %vm1607_vm0, 0, %v1659_v41 }
 0x1de   : > { %v1665_v44 = vsel %vm1619_vm4, %v1662_v36, 0  ;;  %3551 = vmatmul.msk.bf16.vlgmr.msra.gmra.mxu2 %vm1619_vm4, %v1662_v36  ;;  %v1667_v1 = vsel %vm1619_vm4, %v1664_v40, 0  ;;  %3552 = vmatmul.msk.bf16.vlgmr.msra.gmra.mxu3 %vm1619_vm4, %v1664_v40 }
 0x1df   : > { %v1671_v2 = vshll.u32 %v1665_v44, 16  ;;  %v1677_v45 = vshll.u32 %v1667_v1, 16  ;;  %2449 = vmatpush.bf16.msra.mxu2 %v3779_v43  ;;  %2462 = vmatpush.bf16.msra.mxu3 %v3787_v7  ;;  %v1669_v51 = vshrl.u32 %v1665_v44, 16  ;;  %v1675_v57 = vshrl.u32 %v1667_v1, 16 }
 0x1e0   : > { %v1685_v12 = vrot.slane %v1665_v44, 1  ;;  %v1686_v0 = vrot.slane %v1667_v1, 1  ;;  %v1697_v22 = vrot.slane %v1665_v44, 2  ;;  %v1698_v23 = vrot.slane %v1667_v1, 2 }
 0x1e1   : > { %v1673_v56 = vrot.slane %v1671_v2, 1  ;;  %v1679_v60 = vrot.slane %v1677_v45, 1  ;;  %v1689_v61 = vrot.slane %v1669_v51, 1  ;;  %v1690_v62 = vrot.slane %v1671_v2, 2 }
 0x1e2   : > { %v1692_v14 = vrot.slane %v1675_v57, 1  ;;  %v1693_v15 = vrot.slane %v1677_v45, 2 }
 0x1e3   : > { %2450 = vmatpush.bf16.msra.mxu2 %v3778_v46  ;;  %2463 = vmatpush.bf16.msra.mxu3 %v3786_v50  ;;  %v1674_v63 = vor.u32 %v1673_v56, %v1669_v51  ;;  %v1680_v5 = vor.u32 %v1679_v60, %v1675_v57  ;;  %v1691_v16 = vor.u32 %v1690_v62, %v1689_v61 }
 0x1e4   : > { %v1694_v17 = vor.u32 %v1693_v15, %v1692_v14 }
 0x1e5   : > { %2379 = vmatmul.bf16.vlgmr.msrb.gmra.mxu0 %v1674_v63  ;;  %2392 = vmatmul.bf16.vlgmr.msrb.gmra.mxu1 %v1680_v5 }
 0x1e7   : > { %2451 = vmatpush.bf16.msra.mxu2 %v3777_v6  ;;  %2464 = vmatpush.bf16.msra.mxu3 %v3785_v8 }
 0x1eb   : > { %2452 = vmatpush.bf16.msra.mxu2 %v3776_v9  ;;  %2465 = vmatpush.bf16.msra.mxu3 %v3784_v10 }
 0x1ee   : > { %2405 = vmatmul.bf16.vlgmr.msrb.gmra.mxu2 %v1685_v12  ;;  %2418 = vmatmul.bf16.vlgmr.msrb.gmra.mxu3 %v1686_v0 }
 0x1ef   : > { %2453 = vmatpush.bf16.msra.mxu2 %v3775_v58  ;;  %2466 = vmatpush.bf16.msra.mxu3 %v3783_v11 }
 0x1f3   : > { %2454 = vmatpush.bf16.msra.mxu2 %v3774_v13  ;;  %2467 = vmatpush.bf16.msra.mxu3 %v3782_v52 }
 0x1f5   : > { %2431 = vmatmul.bf16.vlgmr.msra.gmra.mxu0 %v1691_v16  ;;  %2444 = vmatmul.bf16.vlgmr.msra.gmra.mxu1 %v1694_v17 }
 0x1f7   : > { %2455 = vmatpush.bf16.msra.mxu2 %v3773_v18  ;;  %2468 = vmatpush.bf16.msra.mxu3 %v3781_v19 }
 0x1fb   : > { %2456 = vmatpush.bf16.msra.mxu2 %v3772_v20  ;;  %2469 = vmatpush.bf16.msra.mxu3 %v3780_v21 }
 0x1fe   : > { %2457 = vmatmul.bf16.vlgmr.msra.gmra.mxu2 %v1697_v22  ;;  %2470 = vmatmul.bf16.vlgmr.msra.gmra.mxu3 %v1698_v23 }
 0x261   : > { %v2354_v24 = vpop.f32.mrf.mxu2  ;;  %v2367_v25 = vpop.f32.mrf.mxu3 }
 0x262   : > { %v2380_v27 = vpop.f32.mrf.mxu0  ;;  %v2393_v29 = vpop.f32.mrf.mxu1  ;;  %v2355_v30 = vadd.f32 %v3855_v26, %v2354_v24 }
 0x264   : > { %v2368_v48 = vadd.f32 %v2367_v25, %v2355_v30 }
 0x266   : > { %v2381_v55 = vadd.f32 %v2380_v27, %v2368_v48 }
 0x268   : > { %v2394_v4 = vadd.f32 %v2393_v29, %v2381_v55 }
 0x269   : > { %v2356_v59 = vpop.f32.mrf.mxu2  ;;  %v2369_v3 = vpop.f32.mrf.mxu3 }
 0x26a   : > { %v2382_v42 = vpop.f32.mrf.mxu0  ;;  %v2395_v53 = vpop.f32.mrf.mxu1 }
 0x271   : > { %v2406_v32 = vpop.f32.mrf.mxu2  ;;  %v2419_v28 = vpop.f32.mrf.mxu3 }
 0x272   : > { %v2432_v33 = vpop.f32.mrf.mxu0  ;;  %v2445_v49 = vpop.f32.mrf.mxu1  ;;  %v2407_v54 = vadd.f32 %v2406_v32, %v2394_v4 }
 0x274   : > { %v2420_v34 = vadd.f32 %v2419_v28, %v2407_v54 }
 0x276   : > { %v2433_v38 = vadd.f32 %v2432_v33, %v2420_v34 }
 0x278   : > { %v2446_v39 = vadd.f32 %v2445_v49, %v2433_v38 }
 0x279   : > { %v2408_v31 = vpop.f32.mrf.mxu2  ;;  %v2421_v47 = vpop.f32.mrf.mxu3 }
 0x27a   : > { %v2434_v35 = vpop.f32.mrf.mxu0  ;;  %v2447_v37 = vpop.f32.mrf.mxu1 }
 0x281   : > { %v2458_v41 = vpop.f32.mrf.mxu2  ;;  %v2471_v43 = vpop.f32.mrf.mxu3 }
 0x282   : > { %v2459_v7 = vadd.f32 %v2458_v41, %v2446_v39 }
 0x284   : > { %v2472_v36 = vadd.f32 %v2471_v43, %v2459_v7 }
 0x286   : > { %v2475_v40 = vmax.f32 %v2472_v36, 0.0 }
 0x288   : > { %v2477_v44 = vrot.slane %v2475_v40, 1  ;;  %v2480_v46 = vrot.slane %v2475_v40, 2 }
 0x289   : > { %v2460_v1 = vpop.f32.mrf.mxu2  ;;  %v2473_v2 = vpop.f32.mrf.mxu3 }
 0x28a   : > { %v2479_v45 = vmax.f32 %v2475_v40, %v2477_v44 }
 0x28c   : > { %v2482_v50 = vmax.f32 %v2479_v45, %v2480_v46 }
 0x28e   : > { %v2484_v51 = vrot.slane %v2482_v50, 1  ;;  %v2486_v56 = vrot.slane %v2482_v50, 2 }
 0x290   : > { %v2488_v57 = vsel %vm1607_vm0, %v2482_v50, %v2484_v51 }
 0x291   : > { %v2489_v60 = vsel %vm1610_vm1, %v2488_v57, %v2486_v56 }
 0x292   : > { %2491 = vrot.lane.b32.xlu1 %v2489_v60, %s3957_s15 }
 0x29a   : > { %2497 = vrot.lane.b32.xlu1 %v2489_v60, %s3958_s12 }
 0x304   : > { %v2492_v63 = vpop.permute.xlu1 %2491 }
 0x305   : > { %v2495_v5 = vsel %vm2494_vm9, %v2492_v63, 0.0 }
 0x306   : > { %v2496_v6 = vmax.f32 %v2489_v60, %v2495_v5 }
 0x30c   : > { %v2498_v8 = vpop.permute.xlu1 %2497 }
 0x30d   : > { %v2501_v9 = vsel %vm2500_vm10, %v2498_v8, 0.0 }
 0x30e   : > { %v2502_v10 = vmax.f32 %v2496_v6, %v2501_v9 }
 0x310   : > { %v2504_v58 = vrot.slane %v2502_v10, 1 }
 0x312   : > { %v2506_v11 = vadd.f32 %v2504_v58, %v2502_v10 }
 0x314   : > { %2508 = vrot.lane.b32.xlu2 %v2506_v11, %s3958_s12  ;;  %s2543_s12 = sshll.u32 %s233_s13, 4  ;;  %s2544_s12 = int_to_ptr.vmem [resolvable:$true] %s2543_s12 }
 0x36e   : > { %v2509_v12 = vpop.permute.xlu2 %2508 }
 0x36f   : > { %v2511_v0 = vadd.f32 %v2509_v12, %v2506_v11 }
 0x371   : > { %v2512_v13 = vmul.f32 0.25, %v2511_v0 }
 0x373   : > { %2514 = vrot.lane.b32.xlu2 %v2512_v13, %s3957_s15  ;;  %v2517_v52 = vrot.slane %v2512_v13, 1  ;;  %s2533_s15 = scalar_lea.sflag [#allocation4], %s232_s8 }
 0x375   : > { %2521 = vrot.lane.b32.xlu1 %v2517_v52, %s3959_s6  ;;  %2518 = vrot.lane.b32.xlu0 %v2517_v52, %s3960_s7 }
 0x3cd   : > { %v2515_v61 = vpop.permute.xlu2 %2514 }
 0x3ce   : > { %v2525_v62 = vsel %vm2524_vm11, %v2512_v13, %v2515_v61 }
 0x3e7   : > { %v2522_v14 = vpop.permute.xlu1 %2521  ;;  %v2519_v15 = vpop.permute.xlu0 %2518 }
 0x3e8   : > { %v2527_v16 = vsel %vm2526_vm12, %v2525_v62, %v2519_v15 }
 0x3e9   : > { %v2529_v17 = vsel %vm2528_vm13, %v2527_v16, %v2522_v14 }
 0x3ea   : > { %2531 = vst.msk [vmem:[%s233_s13] sm:$0x1] %vm2530_vm14, %v2529_v17 }
 0x3eb   : > { %3913 = shalt.err (!%p3910_p8)
}
 0x3ec   : > { %3793 = dma.vmem_to_hbm [thread:$0]  (%p4029_p5), %s2544_s12, 16, %s2546_s14, %s2533_s15  }
 0x3ed PF: > { %p3805_p9 = scmp.ge.s32.totalorder %s3952_s21, 2  ;;  %s2557_s6 = sand.u32 1, %s3940_s18  }
 0x3ee   : > { %s2558_s7 = scalar_lea.sflag [#allocation4], %s2557_s6 }
 0x3ef   : > { %p3800_p10 = pnand %p3805_p9, %p4033_p6 }
 0x3f1   : > { %p3801_p11 = pneg %p3800_p10 }
 0x3f3   : > { %3935 = dma.done.wait (%p3801_p11), %s2558_s7, 16  }
 0x3f4   : > { %3937 = vsyncadd (%p3801_p11), %s2558_s7, 4294967280  ;;  %p16_p12 = scmp.ge.s32.totalorder %s4016_s24, 4   ;;  %s4482_s18 = smov %s3944_s19 }
 0x3f5   : > { %s4483_s19 = smov %s3948_s20  ;;  %s4484_s20 = smov %s4027_s27 }
 0x3f6   : > { %s4485_s21 = smov %s4016_s24  ;;  %18 = sbr.rel (!%p16_p12) target bundleno = 4 (0x4), region = 80 }
 0x3fb   :  { %2563 = vsyncpa [#allocation3], 1 }
 0x3fc   :  { %2565 = vsyncpa [#allocation3 + $0x1], 1 }
 0x3fd   :  { %2566 = vsyncpa [#allocation4], 1 }
 0x3fe   :  { %2568 = vsyncpa [#allocation4 + $0x1], 1 }

</bundles_post_ra>
